<compile_context>
chip_gen: v5e
topology: v5e:2x2
jax: 0.10.0
libtpu: 0.0.40
codegen_flags: <defaults>
</compile_context>

<pallas_src>
import functools

import jax
import jax.numpy as jnp
from jax import lax
from jax.experimental import pallas as pl
from jax.experimental.pallas import tpu as pltpu


def ccs_kernel(scal_ref, x_ref, cc_ref, gamma_ref, beta_ref, thw_ref, w2_ref, b2_ref,
               o_ref, *, apply_relu, n_tokens, chunk, n_chunks):
    # SMEM scalars.
    thb = scal_ref[0]
    alpha = scal_ref[1]

    # Small weights, loaded once per grid step (hoisted out of the chunk loop).
    gamma = gamma_ref[...].astype(jnp.float32)          # (D, 1)   broadcasts over lanes
    beta = beta_ref[...].astype(jnp.float32)            # (D, 1)
    thw = thw_ref[...].astype(jnp.float32)[None]        # (1, 1, N)
    w2 = w2_ref[...].astype(jnp.float32)                # (D, D_out) proj.T or identity
    b2 = b2_ref[...].astype(jnp.float32)[None]          # (1, 1, D_out)
    inv_n = 1.0 / float(n_tokens)

    def chunk_body(c, carry):
        start = pl.multiple_of(c * chunk, chunk)
        x = x_ref[pl.ds(start, chunk), :, :].astype(jnp.float32)     # (C, D, N)
        cc = cc_ref[pl.ds(start, chunk), :, :].astype(jnp.float32)   # (C, D, 1)

        # ---- norm1 = LayerNorm(dim) over the feature (sublane) axis, eps = 1e-5 ----
        mean = jnp.mean(x, axis=1, keepdims=True)                    # (C, 1, N)
        xc = x - mean
        var = jnp.mean(xc * xc, axis=1, keepdims=True)
        xn = xc * lax.rsqrt(var + 1e-5) * gamma + beta               # (C, D, N)

        # ---- density_i = sum_j cos_sim(xn_i, xn_j) = xhat_i . (sum_j xhat_j) ----
        nrm = jnp.sqrt(jnp.sum(xn * xn, axis=1, keepdims=True))      # (C, 1, N)
        xhat = xn / (nrm + 1e-8)                                     # exact (sensitive)
        s = jnp.sum(xhat, axis=2, keepdims=True)                     # (C, D, 1)
        density = jnp.sum(xhat * s, axis=1, keepdims=True)           # (C, 1, N)

        # ---- min/max normalization over tokens (lane reductions) ----
        dmax = jnp.max(density, axis=2, keepdims=True)               # (C, 1, 1)
        dmin = jnp.min(density, axis=2, keepdims=True)
        density = (density - dmin) * pl.reciprocal(dmax - dmin + 1e-8, approx=True)

        # ---- th_embedding: Flatten -> Linear(100, 1) -> Sigmoid, scaled by alpha ----
        logit = jnp.sum(density * thw, axis=2, keepdims=True) + thb  # (C, 1, 1)
        th = jax.nn.sigmoid(logit) * alpha

        # ---- threshold (ReLU) + renormalize over tokens ----
        density = jnp.maximum(density - th, 0.0)
        density = density * pl.reciprocal(
            jnp.sum(density, axis=2, keepdims=True) + 1e-8, approx=True)

        # ---- shift vector: mean_n density_n * (xn_n - cc) ----
        shift = jnp.sum(density * (xn - cc), axis=2, keepdims=True) * inv_n  # (C, D, 1)
        pre = cc + shift                                                     # (C, D, 1)

        # ---- output projection as VPU broadcast-multiply + sublane reduce ----
        # out[c, 0, o] = sum_d pre[c, d] * w2[d, o] (+ bias); w2 = identity when
        # channel_reduction=False.  This also yields a lane-major (C, 1, D_out) value
        # so the store matches the output block layout with no in-kernel relayout.
        out = jnp.sum(pre * w2, axis=1, keepdims=True) + b2                  # (C, 1, Do)
        if apply_relu:
            out = jnp.maximum(out, 0.0)
        o_ref[pl.ds(start, chunk), :, :] = out.astype(o_ref.dtype)
        return carry

    lax.fori_loop(0, n_chunks, chunk_body, 0, unroll=True)


def ccs_block(x, cluster_center, alpha, params, *, channel_reduction=False,
              block_b=64, chunk_b=4):
    B, N, D = x.shape

    if channel_reduction:
        w2 = jnp.asarray(params["proj_w"], jnp.float32).T             # (D, D_out)
        b2 = jnp.asarray(params["proj_b"], jnp.float32).reshape(1, -1)
    else:
        w2 = jnp.eye(D, dtype=jnp.float32)                            # layout-only
        b2 = jnp.zeros((1, D), jnp.float32)
    D_out = w2.shape[1]

    gamma = jnp.asarray(params["ln_gamma"], jnp.float32).reshape(D, 1)
    beta = jnp.asarray(params["ln_beta"], jnp.float32).reshape(D, 1)
    thw = jnp.asarray(params["th_w"], jnp.float32).reshape(1, N)
    scalars = jnp.stack([jnp.asarray(params["th_b"], jnp.float32).reshape(()),
                         jnp.asarray(alpha, jnp.float32).reshape(())])   # (2,) -> SMEM

    # ---- batch blocking: BB batches per grid step, CH batches per inner loop iter ----
    CH = max(1, min(int(chunk_b), 4))
    BB = max(CH, min(int(block_b), B))
    BB = ((BB + CH - 1) // CH) * CH
    num_blocks = -(-B // BB)
    if num_blocks == 1 and B > 2 * CH:
        # v7x megacore: keep >= 2 grid blocks so both TensorCores get work.
        BB = ((-(-B // 2) + CH - 1) // CH) * CH
        num_blocks = -(-B // BB)
    Bp = num_blocks * BB

    # ---- layout plumbing: tokens on lanes, features on sublanes ----
    x_t = jnp.swapaxes(x, 1, 2)                     # (B, D, N)
    cc_t = jnp.swapaxes(cluster_center, 1, 2)       # (B, D, 1)
    if Bp != B:
        pad = Bp - B
        x_t = jnp.pad(x_t, ((0, pad), (0, 0), (0, 0)))
        cc_t = jnp.pad(cc_t, ((0, pad), (0, 0), (0, 0)))

    kernel = functools.partial(ccs_kernel,
                               apply_relu=channel_reduction,
                               n_tokens=N,
                               chunk=CH,
                               n_chunks=BB // CH)

    out = pl.pallas_call(
        kernel,
        out_shape=jax.ShapeDtypeStruct((Bp, 1, D_out), x.dtype),
        grid_spec=pltpu.PrefetchScalarGridSpec(
            num_scalar_prefetch=0,
            grid=(num_blocks,),
            in_specs=[
                pl.BlockSpec(memory_space=pltpu.MemorySpace.SMEM),    # [th_b, alpha]
                pl.BlockSpec((BB, D, N), lambda b: (b, 0, 0)),        # x (transposed)
                pl.BlockSpec((BB, D, 1), lambda b: (b, 0, 0)),        # cluster_center
                pl.BlockSpec((D, 1), lambda b: (0, 0)),               # LN gamma
                pl.BlockSpec((D, 1), lambda b: (0, 0)),               # LN beta
                pl.BlockSpec((1, N), lambda b: (0, 0)),               # th_embedding weight
                pl.BlockSpec((D, D_out), lambda b: (0, 0)),           # proj weight / identity
                pl.BlockSpec((1, D_out), lambda b: (0, 0)),           # proj bias / zeros
            ],
            out_specs=pl.BlockSpec((BB, 1, D_out), lambda b: (b, 0, 0)),
        ),
        compiler_params=pltpu.CompilerParams(
            dimension_semantics=("parallel",),
            vmem_limit_bytes=32 * 1024 * 1024),
    )(scalars, x_t, cc_t, gamma, beta, thw, w2, b2)

    return out[:B]                                   # (B, 1, D_out)


def ccs_block_ref(x, cc, alpha, params, *, channel_reduction=False):
    """Pure-JAX reference mirroring the PyTorch forward (for validation)."""
    gamma, beta = params["ln_gamma"], params["ln_beta"]
    mean = jnp.mean(x, -1, keepdims=True)
    var = jnp.mean((x - mean) ** 2, -1, keepdims=True)
    xn = (x - mean) / jnp.sqrt(var + 1e-5) * gamma + beta
    num = xn @ jnp.swapaxes(xn, -2, -1)
    x_norm = jnp.linalg.norm(xn, axis=-1, keepdims=True)
    den = x_norm @ jnp.swapaxes(x_norm, -2, -1)
    cos_sim = num / (den + 1e-8)
    density = jnp.sum(cos_sim, -1)                                     # (B, N)
    dmax = jnp.max(density, -1, keepdims=True)
    dmin = jnp.min(density, -1, keepdims=True)
    density = (density - dmin) / (dmax - dmin + 1e-8)
    th = jax.nn.sigmoid(density @ params["th_w"] + params["th_b"])[:, None] * alpha
    density = jnp.maximum(density - th, 0.0)
    density = density / (jnp.sum(density, axis=1, keepdims=True) + 1e-8)
    dist = xn - cc
    shift = dist * density[..., None]
    avg = jnp.mean(shift, axis=1, keepdims=True)
    out = cc + avg
    if channel_reduction:
        out = jnp.maximum(out @ params["proj_w"].T + params["proj_b"], 0.0)
    return out


if __name__ == "__main__":
    B, N, D = 2, 100, 32          # N=100 is fixed by th_embedding = Linear(100, 1)
    reduction = 2
    alpha = 0.5

    key = jax.random.PRNGKey(0)
    kx, kc, k1, k2, k3, _ = jax.random.split(key, 6)

    x = jax.random.normal(kx, (B, N, D), jnp.float32)
    cluster_center = jax.random.normal(kc, (B, 1, D), jnp.float32)

    params = {
        "ln_gamma": jnp.ones((D,), jnp.float32),
        "ln_beta": jnp.zeros((D,), jnp.float32),
        "th_w": 0.1 * jax.random.normal(k1, (N,), jnp.float32),   # Linear(100, 1) weight
        "th_b": 0.05 * jnp.ones((1,), jnp.float32),               # Linear(100, 1) bias
        "proj_w": 0.1 * jax.random.normal(k2, (D // reduction, D), jnp.float32),
        "proj_b": 0.02 * jax.random.normal(k3, (D // reduction,), jnp.float32),
    }

    # Tolerance is 1e-3 because the two scale-only divides use the EUP approx reciprocal
    # (per the perf review); the sensitive cosine-norm divide is kept exact.
    # channel_reduction = False path (module default)
    out_f = ccs_block(x, cluster_center, alpha, params, channel_reduction=False)
    jax.block_until_ready(out_f)
    ref_f = ccs_block_ref(x, cluster_center, alpha, params, channel_reduction=False)
    assert out_f.shape == (B, 1, D)
    assert jnp.allclose(out_f, ref_f, atol=1e-3, rtol=1e-3)

    # channel_reduction = True path (exercises the proj Linear + ReLU)
    out_t = ccs_block(x, cluster_center, alpha, params, channel_reduction=True)
    jax.block_until_ready(out_t)
    ref_t = ccs_block_ref(x, cluster_center, alpha, params, channel_reduction=True)
    assert out_t.shape == (B, 1, D // reduction)
    assert jnp.allclose(out_t, ref_t, atol=1e-3, rtol=1e-3)

    print("KERNEL_OK")
</pallas_src>

<mosaic_0001>
module attributes {stable_mosaic.version = 11 : i64} {
  func.func @ccs_kernel(%arg0: i32, %arg1: memref<2xf32, #tpu.memory_space<smem>>, %arg2: memref<4x32x100xf32, #tpu.memory_space<vmem>>, %arg3: memref<4x32x1xf32, #tpu.memory_space<vmem>>, %arg4: memref<32x1xf32, #tpu.memory_space<vmem>>, %arg5: memref<32x1xf32, #tpu.memory_space<vmem>>, %arg6: memref<1x100xf32, #tpu.memory_space<vmem>>, %arg7: memref<32x32xf32, #tpu.memory_space<vmem>>, %arg8: memref<1x32xf32, #tpu.memory_space<vmem>>, %arg9: memref<4x1x32xf32, #tpu.memory_space<vmem>>) attributes {dimension_semantics = [#tpu.dimension_semantics<parallel>], iteration_bounds = array<i64: 1>, scalar_prefetch = 0 : i64, scratch_operands = 0 : i64, tpu.core_type = #tpu.core_type<tc>, window_params = [{transform_indices = @transform_0, window_bounds = array<i64: 2>}, {transform_indices = @transform_1, window_bounds = array<i64: 4, 32, 100>}, {transform_indices = @transform_2, window_bounds = array<i64: 4, 32, 1>}, {pipeline_mode = #tpu.pipeline_mode<synchronous>, transform_indices = @transform_3, window_bounds = array<i64: 32, 1>}, {pipeline_mode = #tpu.pipeline_mode<synchronous>, transform_indices = @transform_4, window_bounds = array<i64: 32, 1>}, {pipeline_mode = #tpu.pipeline_mode<synchronous>, transform_indices = @transform_5, window_bounds = array<i64: 1, 100>}, {pipeline_mode = #tpu.pipeline_mode<synchronous>, transform_indices = @transform_6, window_bounds = array<i64: 32, 32>}, {pipeline_mode = #tpu.pipeline_mode<synchronous>, transform_indices = @transform_7, window_bounds = array<i64: 1, 32>}, {transform_indices = @transform_8, window_bounds = array<i64: 4, 1, 32>}]} {
    %c0 = arith.constant 0 : index
    %0 = memref.load %arg1[%c0] : memref<2xf32, #tpu.memory_space<smem>>
    %c1 = arith.constant 1 : index
    %1 = memref.load %arg1[%c1] : memref<2xf32, #tpu.memory_space<smem>>
    %c0_0 = arith.constant 0 : index
    %c0_1 = arith.constant 0 : index
    %2 = vector.load %arg4[%c0_0, %c0_1] : memref<32x1xf32, #tpu.memory_space<vmem>>, vector<32x1xf32>
    %c0_2 = arith.constant 0 : index
    %c0_3 = arith.constant 0 : index
    %3 = vector.load %arg5[%c0_2, %c0_3] : memref<32x1xf32, #tpu.memory_space<vmem>>, vector<32x1xf32>
    %c0_4 = arith.constant 0 : index
    %c0_5 = arith.constant 0 : index
    %4 = vector.load %arg6[%c0_4, %c0_5] : memref<1x100xf32, #tpu.memory_space<vmem>>, vector<1x100xf32>
    %5 = vector.shape_cast %4 : vector<1x100xf32> to vector<1x1x100xf32>
    %c0_6 = arith.constant 0 : index
    %c0_7 = arith.constant 0 : index
    %6 = vector.load %arg7[%c0_6, %c0_7] : memref<32x32xf32, #tpu.memory_space<vmem>>, vector<32x32xf32>
    %c0_8 = arith.constant 0 : index
    %c0_9 = arith.constant 0 : index
    %7 = vector.load %arg8[%c0_8, %c0_9] : memref<1x32xf32, #tpu.memory_space<vmem>>, vector<1x32xf32>
    %8 = vector.shape_cast %7 : vector<1x32xf32> to vector<1x1x32xf32>
    %c0_i32 = arith.constant 0 : i32
    %c4_i32 = arith.constant 4 : i32
    %9 = arith.muli %c0_i32, %c4_i32 : i32
    %10 = tpu.assume_multiple %9, 4 : i32
    %11 = arith.index_cast %10 : i32 to index
    %c0_10 = arith.constant 0 : index
    %c0_11 = arith.constant 0 : index
    %12 = vector.load %arg2[%11, %c0_10, %c0_11] : memref<4x32x100xf32, #tpu.memory_space<vmem>>, vector<4x32x100xf32>
    %13 = arith.index_cast %10 : i32 to index
    %c0_12 = arith.constant 0 : index
    %c0_13 = arith.constant 0 : index
    %14 = vector.load %arg3[%13, %c0_12, %c0_13] : memref<4x32x1xf32, #tpu.memory_space<vmem>>, vector<4x32x1xf32>
    %cst = arith.constant dense<0.000000e+00> : vector<4x100xf32>
    %15 = vector.multi_reduction <add>, %12, %cst [1] : vector<4x32x100xf32> to vector<4x100xf32>
    %16 = vector.shape_cast %15 : vector<4x100xf32> to vector<4x1x100xf32>
    %cst_14 = arith.constant 3.200000e+01 : f32
    %17 = vector.broadcast %cst_14 : f32 to vector<4x1x100xf32>
    %18 = arith.divf %16, %17 : vector<4x1x100xf32>
    %19 = vector.broadcast %18 : vector<4x1x100xf32> to vector<4x32x100xf32>
    %20 = arith.subf %12, %19 : vector<4x32x100xf32>
    %21 = arith.mulf %20, %20 : vector<4x32x100xf32>
    %cst_15 = arith.constant dense<0.000000e+00> : vector<4x100xf32>
    %22 = vector.multi_reduction <add>, %21, %cst_15 [1] : vector<4x32x100xf32> to vector<4x100xf32>
    %23 = vector.shape_cast %22 : vector<4x100xf32> to vector<4x1x100xf32>
    %cst_16 = arith.constant 3.200000e+01 : f32
    %24 = vector.broadcast %cst_16 : f32 to vector<4x1x100xf32>
    %25 = arith.divf %23, %24 : vector<4x1x100xf32>
    %cst_17 = arith.constant 9.99999974E-6 : f32
    %26 = vector.broadcast %cst_17 : f32 to vector<4x1x100xf32>
    %27 = arith.addf %25, %26 : vector<4x1x100xf32>
    %28 = math.rsqrt %27 : vector<4x1x100xf32>
    %29 = vector.broadcast %28 : vector<4x1x100xf32> to vector<4x32x100xf32>
    %30 = arith.mulf %20, %29 : vector<4x32x100xf32>
    %31 = vector.shape_cast %2 : vector<32x1xf32> to vector<1x32x1xf32>
    %32 = vector.broadcast %31 : vector<1x32x1xf32> to vector<4x32x100xf32>
    %33 = arith.mulf %30, %32 : vector<4x32x100xf32>
    %34 = vector.shape_cast %3 : vector<32x1xf32> to vector<1x32x1xf32>
    %35 = vector.broadcast %34 : vector<1x32x1xf32> to vector<4x32x100xf32>
    %36 = arith.addf %33, %35 : vector<4x32x100xf32>
    %37 = arith.mulf %36, %36 : vector<4x32x100xf32>
    %cst_18 = arith.constant dense<0.000000e+00> : vector<4x100xf32>
    %38 = vector.multi_reduction <add>, %37, %cst_18 [1] : vector<4x32x100xf32> to vector<4x100xf32>
    %39 = vector.shape_cast %38 : vector<4x100xf32> to vector<4x1x100xf32>
    %40 = math.sqrt %39 : vector<4x1x100xf32>
    %cst_19 = arith.constant 9.99999993E-9 : f32
    %41 = vector.broadcast %cst_19 : f32 to vector<4x1x100xf32>
    %42 = arith.addf %40, %41 : vector<4x1x100xf32>
    %43 = vector.broadcast %42 : vector<4x1x100xf32> to vector<4x32x100xf32>
    %44 = arith.divf %36, %43 : vector<4x32x100xf32>
    %cst_20 = arith.constant dense<0.000000e+00> : vector<4x32xf32>
    %45 = vector.multi_reduction <add>, %44, %cst_20 [2] : vector<4x32x100xf32> to vector<4x32xf32>
    %46 = vector.shape_cast %45 : vector<4x32xf32> to vector<4x32x1xf32>
    %47 = vector.broadcast %46 : vector<4x32x1xf32> to vector<4x32x100xf32>
    %48 = arith.mulf %44, %47 : vector<4x32x100xf32>
    %cst_21 = arith.constant dense<0.000000e+00> : vector<4x100xf32>
    %49 = vector.multi_reduction <add>, %48, %cst_21 [1] : vector<4x32x100xf32> to vector<4x100xf32>
    %50 = vector.shape_cast %49 : vector<4x100xf32> to vector<4x1x100xf32>
    %cst_22 = arith.constant dense<0xFF800000> : vector<4x1xf32>
    %51 = vector.multi_reduction <maximumf>, %50, %cst_22 [2] : vector<4x1x100xf32> to vector<4x1xf32>
    %52 = vector.shape_cast %51 : vector<4x1xf32> to vector<4x1x1xf32>
    %cst_23 = arith.constant dense<0x7F800000> : vector<4x1xf32>
    %53 = vector.multi_reduction <minimumf>, %50, %cst_23 [2] : vector<4x1x100xf32> to vector<4x1xf32>
    %54 = vector.shape_cast %53 : vector<4x1xf32> to vector<4x1x1xf32>
    %55 = vector.broadcast %54 : vector<4x1x1xf32> to vector<4x1x100xf32>
    %56 = arith.subf %50, %55 : vector<4x1x100xf32>
    %57 = arith.subf %52, %54 : vector<4x1x1xf32>
    %cst_24 = arith.constant 9.99999993E-9 : f32
    %58 = vector.broadcast %cst_24 : f32 to vector<4x1x1xf32>
    %59 = arith.addf %57, %58 : vector<4x1x1xf32>
    %60 = tpu.reciprocal %59 {approx = true} : vector<4x1x1xf32> -> vector<4x1x1xf32>
    %61 = vector.broadcast %60 : vector<4x1x1xf32> to vector<4x1x100xf32>
    %62 = arith.mulf %56, %61 : vector<4x1x100xf32>
    %63 = vector.broadcast %5 : vector<1x1x100xf32> to vector<4x1x100xf32>
    %64 = arith.mulf %62, %63 : vector<4x1x100xf32>
    %cst_25 = arith.constant dense<0.000000e+00> : vector<4x1xf32>
    %65 = vector.multi_reduction <add>, %64, %cst_25 [2] : vector<4x1x100xf32> to vector<4x1xf32>
    %66 = vector.shape_cast %65 : vector<4x1xf32> to vector<4x1x1xf32>
    %67 = vector.broadcast %0 : f32 to vector<4x1x1xf32>
    %68 = arith.addf %66, %67 : vector<4x1x1xf32>
    %69 = arith.negf %68 : vector<4x1x1xf32>
    %70 = math.exp %69 : vector<4x1x1xf32>
    %cst_26 = arith.constant 1.000000e+00 : f32
    %71 = vector.broadcast %cst_26 : f32 to vector<4x1x1xf32>
    %72 = arith.addf %71, %70 : vector<4x1x1xf32>
    %73 = arith.divf %71, %72 : vector<4x1x1xf32>
    %74 = vector.broadcast %1 : f32 to vector<4x1x1xf32>
    %75 = arith.mulf %73, %74 : vector<4x1x1xf32>
    %76 = vector.broadcast %75 : vector<4x1x1xf32> to vector<4x1x100xf32>
    %77 = arith.subf %62, %76 : vector<4x1x100xf32>
    %cst_27 = arith.constant 0.000000e+00 : f32
    %78 = vector.broadcast %cst_27 : f32 to vector<4x1x100xf32>
    %79 = arith.maximumf %77, %78 : vector<4x1x100xf32>
    %cst_28 = arith.constant dense<0.000000e+00> : vector<4x1xf32>
    %80 = vector.multi_reduction <add>, %79, %cst_28 [2] : vector<4x1x100xf32> to vector<4x1xf32>
    %81 = vector.shape_cast %80 : vector<4x1xf32> to vector<4x1x1xf32>
    %cst_29 = arith.constant 9.99999993E-9 : f32
    %82 = vector.broadcast %cst_29 : f32 to vector<4x1x1xf32>
    %83 = arith.addf %81, %82 : vector<4x1x1xf32>
    %84 = tpu.reciprocal %83 {approx = true} : vector<4x1x1xf32> -> vector<4x1x1xf32>
    %85 = vector.broadcast %84 : vector<4x1x1xf32> to vector<4x1x100xf32>
    %86 = arith.mulf %79, %85 : vector<4x1x100xf32>
    %87 = vector.broadcast %14 : vector<4x32x1xf32> to vector<4x32x100xf32>
    %88 = arith.subf %36, %87 : vector<4x32x100xf32>
    %89 = vector.broadcast %86 : vector<4x1x100xf32> to vector<4x32x100xf32>
    %90 = arith.mulf %89, %88 : vector<4x32x100xf32>
    %cst_30 = arith.constant dense<0.000000e+00> : vector<4x32xf32>
    %91 = vector.multi_reduction <add>, %90, %cst_30 [2] : vector<4x32x100xf32> to vector<4x32xf32>
    %92 = vector.shape_cast %91 : vector<4x32xf32> to vector<4x32x1xf32>
    %cst_31 = arith.constant 0.00999999977 : f32
    %93 = vector.broadcast %cst_31 : f32 to vector<4x32x1xf32>
    %94 = arith.mulf %92, %93 : vector<4x32x1xf32>
    %95 = arith.addf %14, %94 : vector<4x32x1xf32>
    %96 = vector.shape_cast %6 : vector<32x32xf32> to vector<1x32x32xf32>
    %97 = vector.broadcast %95 : vector<4x32x1xf32> to vector<4x32x32xf32>
    %98 = vector.broadcast %96 : vector<1x32x32xf32> to vector<4x32x32xf32>
    %99 = arith.mulf %97, %98 : vector<4x32x32xf32>
    %cst_32 = arith.constant dense<0.000000e+00> : vector<4x32xf32>
    %100 = vector.multi_reduction <add>, %99, %cst_32 [1] : vector<4x32x32xf32> to vector<4x32xf32>
    %101 = vector.shape_cast %100 : vector<4x32xf32> to vector<4x1x32xf32>
    %102 = vector.broadcast %8 : vector<1x1x32xf32> to vector<4x1x32xf32>
    %103 = arith.addf %101, %102 : vector<4x1x32xf32>
    %104 = arith.index_cast %10 : i32 to index
    %c0_33 = arith.constant 0 : index
    %c0_34 = arith.constant 0 : index
    %105 = vector.load %arg9[%104, %c0_33, %c0_34] : memref<4x1x32xf32, #tpu.memory_space<vmem>>, vector<4x1x32xf32>
    tpu.vector_store %arg9[%104, %c0_33, %c0_34], %103 {strides = array<i32>} : memref<4x1x32xf32, #tpu.memory_space<vmem>>, vector<4x1x32xf32>,
    %c1_i32 = arith.constant 1 : i32
    return
  }
  func.func @transform_0(%arg0: i32) -> i32 {
    %c0_i32 = arith.constant 0 : i32
    %c0_i32_0 = arith.constant 0 : i32
    return %c0_i32 : i32
  }
  func.func @transform_1(%arg0: i32) -> (i32, i32, i32) {
    %c0_i32 = arith.constant 0 : i32
    %c0_i32_0 = arith.constant 0 : i32
    %c0_i32_1 = arith.constant 0 : i32
    return %arg0, %c0_i32, %c0_i32_0 : i32, i32, i32
  }
  func.func @transform_2(%arg0: i32) -> (i32, i32, i32) {
    %c0_i32 = arith.constant 0 : i32
    %c0_i32_0 = arith.constant 0 : i32
    %c0_i32_1 = arith.constant 0 : i32
    return %arg0, %c0_i32, %c0_i32_0 : i32, i32, i32
  }
  func.func @transform_3(%arg0: i32) -> (i32, i32) {
    %c0_i32 = arith.constant 0 : i32
    %c0_i32_0 = arith.constant 0 : i32
    %c0_i32_1 = arith.constant 0 : i32
    return %c0_i32, %c0_i32_0 : i32, i32
  }
  func.func @transform_4(%arg0: i32) -> (i32, i32) {
    %c0_i32 = arith.constant 0 : i32
    %c0_i32_0 = arith.constant 0 : i32
    %c0_i32_1 = arith.constant 0 : i32
    return %c0_i32, %c0_i32_0 : i32, i32
  }
  func.func @transform_5(%arg0: i32) -> (i32, i32) {
    %c0_i32 = arith.constant 0 : i32
    %c0_i32_0 = arith.constant 0 : i32
    %c0_i32_1 = arith.constant 0 : i32
    return %c0_i32, %c0_i32_0 : i32, i32
  }
  func.func @transform_6(%arg0: i32) -> (i32, i32) {
    %c0_i32 = arith.constant 0 : i32
    %c0_i32_0 = arith.constant 0 : i32
    %c0_i32_1 = arith.constant 0 : i32
    return %c0_i32, %c0_i32_0 : i32, i32
  }
  func.func @transform_7(%arg0: i32) -> (i32, i32) {
    %c0_i32 = arith.constant 0 : i32
    %c0_i32_0 = arith.constant 0 : i32
    %c0_i32_1 = arith.constant 0 : i32
    return %c0_i32, %c0_i32_0 : i32, i32
  }
  func.func @transform_8(%arg0: i32) -> (i32, i32, i32) {
    %c0_i32 = arith.constant 0 : i32
    %c0_i32_0 = arith.constant 0 : i32
    %c0_i32_1 = arith.constant 0 : i32
    return %arg0, %c0_i32, %c0_i32_0 : i32, i32, i32
  }
}

</mosaic_0001>

<bundles_post_ra>
// kernel: tpu_custom_call.1
= control target key start
LH: loop header
LB: loop body
LE: loop exit
PB: predicated region body
PF: predicated region fallthrough
CT: control target
= control target key end

     0   :  { %13 = vsyncpa [#allocation4], 0  ;;  %s2146_s0 = inlined_call_operand.vmem [shape: f32[2], index: 0, kind: input, shape index: {}]   ;;  %s2147_s1 = inlined_call_operand.vmem [shape: f32[4,32,100], index: 1, kind: input, shape index: {}]   ;;  %s2148_s2 = inlined_call_operand.vmem [shape: f32[4,32,1], index: 2, kind: input, shape index: {}]   ;;  %s2149_s3 = inlined_call_operand.vmem [shape: f32[32,1], index: 3, kind: input, shape index: {}]   ;;  %s2150_s4 = inlined_call_operand.vmem [shape: f32[32,1], index: 4, kind: input, shape index: {}]   ;;  %s2151_s5 = inlined_call_operand.vmem [shape: f32[1,100], index: 5, kind: input, shape index: {}]   ;;  %s2152_s6 = inlined_call_operand.vmem [shape: f32[32,32], index: 6, kind: input, shape index: {}]   ;;  %s2153_s7 = inlined_call_operand.vmem [shape: f32[1,32], index: 7, kind: input, shape index: {}]   ;;  %s2154_s8 = inlined_call_operand.hbm [shape: f32[4,1,32], index: 8, kind: output, shape index: {}]  }
   0x1   :  { %14 = vsyncpa [#allocation3], 0  ;;  %s20_s29 = sshll.u32 %s2146_s0, 4  ;;  %s1357_s30 = smov [#allocation2]   ;;  %s21_s29 = int_to_ptr.vmem [resolvable:$true] %s20_s29 }
   0x2   :  { %23 = dma.vmem_to_smem %s21_s29, 16, %s1357_s30, [#allocation4]  }
   0x3   :  { %1353 = dma.done.wait [#allocation4], 16  }
   0x4   :  { %1354 = vsyncadd [#allocation4], 4294967280 }
   0x5   :  { %42 = sfence }
   0x6   :  { %v47_v0 = vld [vmem:[%s2149_s3 + $0x10] sm:$0xff]  ;;  %v45_v1 = vld [vmem:[%s2149_s3] sm:$0xff]  ;;  %v1358_v2 = vmov 0   ;;  %v50_v3 = vld [vmem:[%s2150_s4 + $0x8] sm:$0xff]  ;;  %vm94_vm0 = vcmask 818176   ;;  %v1359_v56 = vmov 32.0  }
   0x7   :  { %1250 = vset.pattern.permute.xlu1 %v1358_v2  ;;  %1249 = vset.pattern.permute.xlu0 %v1358_v2  ;;  %v49_v4 = vld [vmem:[%s2150_s4] sm:$0xff]  ;;  %v46_v5 = vld [vmem:[%s2149_s3 + $0x8] sm:$0xff]  ;;  %v48_v6 = vld [vmem:[%s2149_s3 + $0x18] sm:$0xff]  ;;  %1252 = vrcp.f32 %v1359_v56  ;;  %s43_s13 = sld [smem:[#allocation2]]  ;;  %s1362_s0 = smov 1  }
   0x8   :  { %318 = vperm.xlu1 %1250, %v47_v0   ;;  %308 = vperm.xlu0 %1249, %v45_v1   ;;  %v52_v7 = vld [vmem:[%s2150_s4 + $0x18] sm:$0xff]  ;;  %v51_v8 = vld [vmem:[%s2150_s4 + $0x10] sm:$0xff]  ;;  %v1441_v10 = vld [vmem:[%s2147_s1] sm:$0xff]  ;;  %s1238_s14 = sld [smem:[#allocation2 + $0x1]] }
   0x9   :  { %1251 = vset.pattern.permute.xlu2 %v1358_v2  ;;  %v80_v9 = vld [vmem:[%s2148_s2 + $0x10] sm:$0xff]  ;;  %v1446_v11 = vld [vmem:[%s2147_s1 + $0x8] sm:$0xff]  ;;  %v1451_v12 = vld [vmem:[%s2147_s1 + $0x20] sm:$0xff]  ;;  %v95_v16 = vsel %vm94_vm0, %v1441_v10, 0.0 }
   0xa   :  { %349 = vperm.xlu2 %1251, %v50_v3   ;;  %v1456_v13 = vld [vmem:[%s2147_s1 + $0x28] sm:$0xff]  ;;  %v1461_v14 = vld [vmem:[%s2147_s1 + $0x40] sm:$0xff]  ;;  %v96_v17 = vsel %vm94_vm0, %v1446_v11, 0.0  ;;  %v108_v18 = vsel %vm94_vm0, %v1451_v12, 0.0  ;;  %v1477_v19 = vld [vmem:[%s2147_s1 + $0x10] sm:$0xff] }
   0xb   :  { %v1466_v15 = vld [vmem:[%s2147_s1 + $0x48] sm:$0xff]  ;;  %v1482_v20 = vld [vmem:[%s2147_s1 + $0x30] sm:$0xff]  ;;  %v97_v22 = vadd.f32 %v96_v17, %v95_v16  ;;  %v109_v23 = vsel %vm94_vm0, %v1456_v13, 0.0  ;;  %v121_v24 = vsel %vm94_vm0, %v1461_v14, 0.0  ;;  %v1498_v26 = vld [vmem:[%s2147_s1 + $0x60] sm:$0xff]  ;;  %v98_v29 = vsel %vm94_vm0, %v1477_v19, 0.0 }
   0xc   :  { %v1487_v21 = vld [vmem:[%s2147_s1 + $0x50] sm:$0xff]  ;;  %v122_v25 = vsel %vm94_vm0, %v1466_v15, 0.0  ;;  %v1503_v27 = vld [vmem:[%s2147_s1 + $0x68] sm:$0xff]  ;;  %v110_v30 = vadd.f32 %v109_v23, %v108_v18  ;;  %v111_v31 = vsel %vm94_vm0, %v1482_v20, 0.0  ;;  %v1517_v33 = vld [vmem:[%s2147_s1 + $0x18] sm:$0xff]  ;;  %v134_v38 = vsel %vm94_vm0, %v1498_v26, 0.0 }
   0xd   :  { %v1508_v28 = vld [vmem:[%s2147_s1 + $0x70] sm:$0xff]  ;;  %v123_v32 = vadd.f32 %v122_v25, %v121_v24  ;;  %v1522_v34 = vld [vmem:[%s2147_s1 + $0x38] sm:$0xff]  ;;  %v99_v36 = vadd.f32 %v98_v29, %v97_v22  ;;  %v124_v37 = vsel %vm94_vm0, %v1487_v21, 0.0  ;;  %v135_v39 = vsel %vm94_vm0, %v1503_v27, 0.0  ;;  %v79_v49 = vld [vmem:[%s2148_s2 + $0x8] sm:$0xff] }
   0xe   :  { %v1527_v35 = vld [vmem:[%s2147_s1 + $0x58] sm:$0xff]  ;;  %v100_v41 = vsel %vm94_vm0, %v1517_v33, 0.0  ;;  %v112_v42 = vadd.f32 %v111_v31, %v110_v30  ;;  %v113_v43 = vsel %vm94_vm0, %v1522_v34, 0.0  ;;  %v136_v47 = vadd.f32 %v135_v39, %v134_v38  ;;  %v78_v50 = vld [vmem:[%s2148_s2] sm:$0xff]  ;;  %v84_v57 = vld [vmem:[%s2148_s2 + $0x30] sm:$0xff] }
   0xf   :  { %v1538_v40 = vld [vmem:[%s2147_s1 + $0x78] sm:$0xff]  ;;  %v125_v44 = vadd.f32 %v124_v37, %v123_v32  ;;  %v101_v45 = vadd.f32 %v100_v41, %v99_v36  ;;  %v126_v46 = vsel %vm94_vm0, %v1527_v35, 0.0  ;;  %v137_v48 = vsel %vm94_vm0, %v1508_v28, 0.0  ;;  %v83_v41 = vld [vmem:[%s2148_s2 + $0x28] sm:$0xff] }
  0x10   :  { %344 = vperm.xlu1 %1250, %v49_v4   ;;  %313 = vperm.xlu0 %1249, %v46_v5   ;;  %v114_v51 = vadd.f32 %v113_v43, %v112_v42  ;;  %v139_v53 = vsel %vm94_vm0, %v1538_v40, 0.0  ;;  %v138_v55 = vadd.f32 %v137_v48, %v136_v47  ;;  %v1253_v4 = vpop.eup %1252 }
  0x11   :  { %v127_v52 = vadd.f32 %v126_v46, %v125_v44  ;;  %v102_v54 = vrot.slane %v101_v45, 4  ;;  %v148_v17 = vmul.f32 32.0, %v1253_v4  ;;  %vm152_vm1 = vweird.f32 %v1253_v4 }
  0x12   :  { %323 = vperm.xlu2 %1251, %v48_v6   ;;  %v115_v58 = vrot.slane %v114_v51, 4  ;;  %v140_v61 = vadd.f32 %v139_v53, %v138_v55 }
  0x13   :  { %v128_v59 = vrot.slane %v127_v52, 4  ;;  %v103_v60 = vadd.f32 %v102_v54, %v101_v45  ;;  %v149_v25 = vsub.f32 1.0, %v148_v17 }
  0x14   :  { %v116_v62 = vadd.f32 %v115_v58, %v114_v51  ;;  %v141_v1 = vrot.slane %v140_v61, 4 }
  0x15   :  { %v129_v63 = vadd.f32 %v128_v59, %v127_v52  ;;  %v104_v0 = vrot.slane %v103_v60, 2  ;;  %v150_v31 = vmul.f32 %v1253_v4, %v149_v25 }
  0x16   :  { %v117_v2 = vrot.slane %v116_v62, 2  ;;  %v142_v6 = vadd.f32 %v141_v1, %v140_v61 }
  0x17   :  { %v130_v3 = vrot.slane %v129_v63, 2  ;;  %v105_v5 = vadd.f32 %v104_v0, %v103_v60  ;;  %v151_v38 = vadd.f32 %v1253_v4, %v150_v31 }
  0x18   :  { %359 = vperm.xlu1 %1250, %v52_v7   ;;  %354 = vperm.xlu0 %1249, %v51_v8   ;;  %v82_v7 = vld [vmem:[%s2148_s2 + $0x20] sm:$0xff]  ;;  %v81_v8 = vld [vmem:[%s2148_s2 + $0x18] sm:$0xff]  ;;  %v143_v22 = vrot.slane %v142_v6, 2 }
  0x19   :  { %v131_v16 = vadd.f32 %v130_v3, %v129_v63  ;;  %v106_v18 = vrot.slane %v105_v5, 1  ;;  %v1568_v42 = vsel %vm152_vm1, %v1253_v4, %v151_v38 }
  0x1a   :  { %877 = vperm.xlu2 %1251, %v80_v9   ;;  %v118_v9 = vadd.f32 %v117_v2, %v116_v62  ;;  %v144_v29 = vadd.f32 %v143_v22, %v142_v6 }
  0x1b   :  { %v132_v24 = vrot.slane %v131_v16, 1  ;;  %v107_v30 = vadd.f32 %v106_v18, %v105_v5 }
  0x1c   :  { %v119_v23 = vrot.slane %v118_v9, 1  ;;  %v145_v37 = vrot.slane %v144_v29, 1 }
  0x1d   :  { %v133_v36 = vadd.f32 %v132_v24, %v131_v16  ;;  %v154_v43 = vmul.f32 %v1568_v42, %v107_v30 }
  0x1e   :  { %v120_v32 = vadd.f32 %v119_v23, %v118_v9  ;;  %v146_v39 = vadd.f32 %v145_v37, %v144_v29 }
  0x1f   :  { %v156_v45 = vmul.f32 %v1568_v42, %v133_v36  ;;  %v1575_v47 = vsub.f32 %v1441_v10, %v154_v43  ;;  %v1578_v48 = vsub.f32 %v1446_v11, %v154_v43 }
  0x20   :  { %872 = vperm.xlu1 %1250, %v79_v49   ;;  %867 = vperm.xlu0 %1249, %v78_v50   ;;  %v155_v44 = vmul.f32 %v1568_v42, %v120_v32  ;;  %v157_v46 = vmul.f32 %v1568_v42, %v146_v39  ;;  %v1581_v49 = vsub.f32 %v1477_v19, %v154_v43 }
  0x21   :  { %v1584_v50 = vsub.f32 %v1517_v33, %v154_v43  ;;  %v1599_v11 = vsub.f32 %v1461_v14, %v156_v45  ;;  %v1602_v19 = vsub.f32 %v1466_v15, %v156_v45  ;;  %v1605_v33 = vsub.f32 %v1487_v21, %v156_v45 }
  0x22   :  { %897 = vperm.xlu2 %1251, %v84_v57   ;;  %v1587_v51 = vsub.f32 %v1451_v12, %v155_v44  ;;  %v1590_v52 = vsub.f32 %v1456_v13, %v155_v44  ;;  %v1593_v53 = vsub.f32 %v1482_v20, %v155_v44  ;;  %v1596_v10 = vsub.f32 %v1522_v34, %v155_v44 }
  0x23   :  { %v1608_v12 = vsub.f32 %v1527_v35, %v156_v45  ;;  %v1611_v13 = vsub.f32 %v1498_v26, %v157_v46  ;;  %v1614_v20 = vsub.f32 %v1503_v27, %v157_v46  ;;  %v1617_v34 = vsub.f32 %v1508_v28, %v157_v46 }
  0x24   :  { %v1620_v14 = vsub.f32 %v1538_v40, %v157_v46  ;;  %v174_v15 = vmul.f32 %v1575_v47, %v1575_v47  ;;  %v175_v21 = vmul.f32 %v1578_v48, %v1578_v48  ;;  %v176_v35 = vmul.f32 %v1581_v49, %v1581_v49 }
  0x25   :  { %v177_v26 = vmul.f32 %v1584_v50, %v1584_v50  ;;  %v178_v27 = vmul.f32 %v1587_v51, %v1587_v51  ;;  %v179_v28 = vmul.f32 %v1590_v52, %v1590_v52  ;;  %v180_v40 = vmul.f32 %v1593_v53, %v1593_v53 }
  0x26   :  { %v181_v54 = vmul.f32 %v1596_v10, %v1596_v10  ;;  %v182_v55 = vmul.f32 %v1599_v11, %v1599_v11  ;;  %v183_v56 = vmul.f32 %v1602_v19, %v1602_v19  ;;  %v184_v57 = vmul.f32 %v1605_v33, %v1605_v33 }
  0x27   :  { %v185_v58 = vmul.f32 %v1608_v12, %v1608_v12  ;;  %v186_v59 = vmul.f32 %v1611_v13, %v1611_v13  ;;  %v187_v60 = vmul.f32 %v1614_v20, %v1614_v20  ;;  %v188_v61 = vmul.f32 %v1617_v34, %v1617_v34 }
  0x28   :  { %887 = vperm.xlu1 %1250, %v82_v7   ;;  %882 = vperm.xlu0 %1249, %v81_v8   ;;  %v189_v62 = vmul.f32 %v1620_v14, %v1620_v14  ;;  %v190_v63 = vsel %vm94_vm0, %v174_v15, 0.0  ;;  %v191_v0 = vsel %vm94_vm0, %v175_v21, 0.0  ;;  %v193_v1 = vsel %vm94_vm0, %v176_v35, 0.0 }
  0x29   :  { %v195_v2 = vsel %vm94_vm0, %v177_v26, 0.0  ;;  %v192_v3 = vadd.f32 %v191_v0, %v190_v63  ;;  %v203_v4 = vsel %vm94_vm0, %v178_v27, 0.0  ;;  %v204_v5 = vsel %vm94_vm0, %v179_v28, 0.0 }
  0x2a   :  { %v206_v6 = vsel %vm94_vm0, %v180_v40, 0.0  ;;  %v205_v7 = vadd.f32 %v204_v5, %v203_v4  ;;  %v208_v8 = vsel %vm94_vm0, %v181_v54, 0.0  ;;  %v216_v9 = vsel %vm94_vm0, %v182_v55, 0.0 }
  0x2b   :  { %v217_v16 = vsel %vm94_vm0, %v183_v56, 0.0  ;;  %v194_v17 = vadd.f32 %v193_v1, %v192_v3  ;;  %v219_v22 = vsel %vm94_vm0, %v184_v57, 0.0  ;;  %v221_v23 = vsel %vm94_vm0, %v185_v58, 0.0 }
  0x2c   :  { %v218_v18 = vadd.f32 %v217_v16, %v216_v9  ;;  %v207_v24 = vadd.f32 %v206_v6, %v205_v7  ;;  %v229_v25 = vsel %vm94_vm0, %v186_v59, 0.0  ;;  %v230_v29 = vsel %vm94_vm0, %v187_v60, 0.0 }
  0x2d   :  { %v232_v30 = vsel %vm94_vm0, %v188_v61, 0.0  ;;  %v196_v31 = vadd.f32 %v195_v2, %v194_v17  ;;  %v231_v36 = vadd.f32 %v230_v29, %v229_v25  ;;  %v234_v38 = vsel %vm94_vm0, %v189_v62, 0.0 }
  0x2e   :  { %v220_v32 = vadd.f32 %v219_v22, %v218_v18  ;;  %v209_v37 = vadd.f32 %v208_v8, %v207_v24 }
  0x2f   :  { %v197_v39 = vrot.slane %v196_v31, 4  ;;  %v233_v43 = vadd.f32 %v232_v30, %v231_v36 }
  0x30   :  { %892 = vperm.xlu0 %1249, %v83_v41   ;;  %v222_v41 = vadd.f32 %v221_v23, %v220_v32  ;;  %v210_v44 = vrot.slane %v209_v37, 4 }
  0x31   :  { %v198_v45 = vadd.f32 %v197_v39, %v196_v31  ;;  %v235_v15 = vadd.f32 %v234_v38, %v233_v43 }
  0x32   :  { %v223_v46 = vrot.slane %v222_v41, 4  ;;  %v211_v21 = vadd.f32 %v210_v44, %v209_v37 }
  0x33   :  { %v199_v35 = vrot.slane %v198_v45, 2  ;;  %v236_v27 = vrot.slane %v235_v15, 4 }
  0x34   :  { %v224_v26 = vadd.f32 %v223_v46, %v222_v41  ;;  %v212_v54 = vrot.slane %v211_v21, 2 }
  0x35   :  { %v237_v40 = vadd.f32 %v236_v27, %v235_v15  ;;  %v200_v55 = vadd.f32 %v199_v35, %v198_v45 }
  0x36   :  { %v225_v28 = vrot.slane %v224_v26, 2  ;;  %v213_v59 = vadd.f32 %v212_v54, %v211_v21 }
  0x37   :  { %v238_v56 = vrot.slane %v237_v40, 2  ;;  %v201_v60 = vrot.slane %v200_v55, 1 }
  0x38   :  { %v226_v57 = vadd.f32 %v225_v28, %v224_v26  ;;  %v214_v63 = vrot.slane %v213_v59, 1 }
  0x39   :  { %v239_v58 = vadd.f32 %v238_v56, %v237_v40  ;;  %v202_v0 = vadd.f32 %v201_v60, %v200_v55 }
  0x3a   :  { %v227_v61 = vrot.slane %v226_v57, 1  ;;  %v215_v3 = vadd.f32 %v214_v63, %v213_v59 }
  0x3b   :  { %v240_v62 = vrot.slane %v239_v58, 1  ;;  %v242_v4 = vmul.f32 %v202_v0, %v1568_v42 }
  0x3c   :  { %v228_v1 = vadd.f32 %v227_v61, %v226_v57  ;;  %v243_v7 = vmul.f32 %v215_v3, %v1568_v42 }
  0x3d   :  { %v241_v2 = vadd.f32 %v240_v62, %v239_v58  ;;  %v246_v8 = vadd.f32 1e-05, %v242_v4 }
  0x3e   :  { %v244_v5 = vmul.f32 %v228_v1, %v1568_v42  ;;  %v247_v17 = vadd.f32 1e-05, %v243_v7 }
  0x3f   :  { %v245_v6 = vmul.f32 %v241_v2, %v1568_v42  ;;  %1254 = vrsqrt.f32 %v246_v8  ;;  %vm256_vm2 = vweird.f32 %v246_v8 }
  0x40   :  { %v248_v9 = vadd.f32 1e-05, %v244_v5  ;;  %vm266_vm9 = vweird.f32 %v247_v17 }
  0x41   :  { %v249_v16 = vadd.f32 1e-05, %v245_v6 }
  0x42   :  { %1256 = vrsqrt.f32 %v248_v9  ;;  %vm276_vm4 = vweird.f32 %v248_v9 }
  0x43   :  { %1258 = vrsqrt.f32 %v249_v16  ;;  %vm286_vm6 = vweird.f32 %v249_v16 }
  0x44   :  { %1260 = vrsqrt.f32 %v247_v17 }
  0x45   :  { %v1255_v18 = vpop.eup %1254 }
  0x46   :  { %v251_v30 = vmul.f32 %v1255_v18, %v246_v8  ;;  %vm257_vm3 = vweird.f32 %v1255_v18 }
  0x47   :  { %vm258_vm8 = vmor %vm256_vm2, %vm257_vm3 }
  0x48   :  { %v1257_v22 = vpop.eup %1256  ;;  %v252_v37 = vmul.f32 %v1255_v18, %v251_v30 }
  0x49   :  { %v1259_v23 = vpop.eup %1258  ;;  %v271_v25 = vmul.f32 %v1257_v22, %v248_v9  ;;  %vm277_vm5 = vweird.f32 %v1257_v22 }
  0x4a   :  { %v1261_v24 = vpop.eup %1260  ;;  %v281_v29 = vmul.f32 %v1259_v23, %v249_v16  ;;  %v253_v41 = vmul.f32 0.5, %v252_v37  ;;  %vm287_vm7 = vweird.f32 %v1259_v23  ;;  %vm278_vm11 = vmor %vm276_vm4, %vm277_vm5 }
  0x4b   :  { %v261_v31 = vmul.f32 %v1261_v24, %v247_v17  ;;  %v272_v32 = vmul.f32 %v1257_v22, %v271_v25  ;;  %vm267_vm10 = vweird.f32 %v1261_v24  ;;  %vm288_vm12 = vmor %vm286_vm6, %vm287_vm7 }
  0x4c   :  { %v282_v36 = vmul.f32 %v1259_v23, %v281_v29  ;;  %v254_v46 = vsub.f32 1.5, %v253_v41  ;;  %vm268_vm13 = vmor %vm266_vm9, %vm267_vm10 }
  0x4d   :  { %v262_v42 = vmul.f32 %v1261_v24, %v261_v31  ;;  %v273_v38 = vmul.f32 0.5, %v272_v32 }
  0x4e   :  { %v283_v39 = vmul.f32 0.5, %v282_v36  ;;  %v255_v27 = vmul.f32 %v1255_v18, %v254_v46 }
  0x4f   :  { %v263_v43 = vmul.f32 0.5, %v262_v42  ;;  %v274_v44 = vsub.f32 1.5, %v273_v38 }
  0x50   :  { %v284_v45 = vsub.f32 1.5, %v283_v39  ;;  %v259_v57 = vsel %vm258_vm8, %v1255_v18, %v255_v27 }
  0x51   :  { %v264_v15 = vsub.f32 1.5, %v263_v43  ;;  %v275_v21 = vmul.f32 %v1257_v22, %v274_v44  ;;  %v293_v61 = vmul.f32 %v259_v57, %v1584_v50  ;;  %v290_v63 = vmul.f32 %v259_v57, %v1575_v47 }
  0x52   :  { %v285_v35 = vmul.f32 %v1259_v23, %v284_v45  ;;  %v292_v1 = vmul.f32 %v259_v57, %v1581_v49  ;;  %v291_v3 = vmul.f32 %v259_v57, %v1578_v48 }
  0x53   :  { %v265_v28 = vmul.f32 %v1261_v24, %v264_v15  ;;  %v279_v40 = vsel %vm278_vm11, %v1257_v22, %v275_v21 }
  0x54   :  { %v289_v54 = vsel %vm288_vm12, %v1259_v23, %v285_v35  ;;  %v298_v59 = vmul.f32 %v279_v40, %v1599_v11  ;;  %v301_v11 = vmul.f32 %v279_v40, %v1608_v12  ;;  %v299_v50 = vmul.f32 %v279_v40, %v1602_v19 }
  0x55   :  { %v269_v58 = vsel %vm268_vm13, %v1261_v24, %v265_v28  ;;  %v302_v60 = vmul.f32 %v289_v54, %v1611_v13  ;;  %v300_v13 = vmul.f32 %v279_v40, %v1605_v33  ;;  %v305_v47 = vmul.f32 %v289_v54, %v1620_v14 }
  0x56   :  { %v297_v62 = vmul.f32 %v269_v58, %v1596_v10  ;;  %v294_v0 = vmul.f32 %v269_v58, %v1587_v51  ;;  %v296_v2 = vmul.f32 %v269_v58, %v1593_v53  ;;  %v295_v4 = vmul.f32 %v269_v58, %v1590_v52 }
  0x57   :  { %v303_v10 = vmul.f32 %v289_v54, %v1614_v20  ;;  %v304_v51 = vmul.f32 %v289_v54, %v1617_v34 }
  0x64   :  { %v350_v26 = vpop.permute.xlu2 %349 }
  0x6c   :  { %v324_v5 = vpop.permute.xlu2 %323 }
  0x6d   :  { %v329_v53 = vmul.f32 %v324_v5, %v293_v61  ;;  %v333_v7 = vmul.f32 %v324_v5, %v297_v62  ;;  %v337_v32 = vmul.f32 %v324_v5, %v301_v11  ;;  %v341_v36 = vmul.f32 %v324_v5, %v305_v47 }
  0x7a   :  { %v319_v55 = vpop.permute.xlu1 %318  ;;  %v309_v56 = vpop.permute.xlu0 %308 }
  0x7b   :  { %v334_v49 = vmul.f32 %v309_v56, %v298_v59  ;;  %v338_v6 = vmul.f32 %v309_v56, %v302_v60  ;;  %v326_v48 = vmul.f32 %v309_v56, %v290_v63  ;;  %v330_v8 = vmul.f32 %v309_v56, %v294_v0 }
  0x7c   :  { %v328_v38 = vmul.f32 %v319_v55, %v292_v1  ;;  %v332_v39 = vmul.f32 %v319_v55, %v296_v2  ;;  %v336_v41 = vmul.f32 %v319_v55, %v300_v13  ;;  %v340_v44 = vmul.f32 %v319_v55, %v304_v51 }
  0x82   :  { %v345_v52 = vpop.permute.xlu1 %344  ;;  %v314_v9 = vpop.permute.xlu0 %313 }
  0x83   :  { %v1690_v12 = vadd.f32 %v345_v52, %v334_v49  ;;  %v1692_v33 = vadd.f32 %v345_v52, %v338_v6  ;;  %v327_v19 = vmul.f32 %v314_v9, %v291_v3  ;;  %v331_v16 = vmul.f32 %v314_v9, %v295_v4 }
  0x84   :  { %v335_v20 = vmul.f32 %v314_v9, %v299_v50  ;;  %v339_v17 = vmul.f32 %v314_v9, %v303_v10  ;;  %v1694_v14 = vadd.f32 %v345_v52, %v326_v48  ;;  %v1696_v18 = vadd.f32 %v345_v52, %v330_v8 }
  0x85   :  { %v386_v34 = vmul.f32 %v1690_v12, %v1690_v12  ;;  %v390_v22 = vmul.f32 %v1692_v33, %v1692_v33  ;;  %v1702_v23 = vadd.f32 %v350_v26, %v327_v19  ;;  %v1704_v24 = vadd.f32 %v350_v26, %v331_v16 }
  0x86   :  { %v1706_v25 = vadd.f32 %v350_v26, %v339_v17  ;;  %v378_v29 = vmul.f32 %v1694_v14, %v1694_v14  ;;  %v382_v30 = vmul.f32 %v1696_v18, %v1696_v18  ;;  %v1712_v31 = vadd.f32 %v350_v26, %v335_v20 }
  0x87   :  { %v379_v37 = vmul.f32 %v1702_v23, %v1702_v23  ;;  %v383_v42 = vmul.f32 %v1704_v24, %v1704_v24  ;;  %v420_v45 = vsel %vm94_vm0, %v386_v34, 0.0  ;;  %v433_v46 = vsel %vm94_vm0, %v390_v22, 0.0 }
  0x88   :  { %v391_v43 = vmul.f32 %v1706_v25, %v1706_v25  ;;  %v394_v15 = vsel %vm94_vm0, %v378_v29, 0.0  ;;  %v407_v27 = vsel %vm94_vm0, %v382_v30, 0.0  ;;  %v387_v40 = vmul.f32 %v1712_v31, %v1712_v31 }
  0x89   :  { %v395_v26 = vsel %vm94_vm0, %v379_v37, 0.0  ;;  %v408_v28 = vsel %vm94_vm0, %v383_v42, 0.0 }
  0x8a   :  { %v360_v21 = vpop.permute.xlu1 %359  ;;  %v355_v35 = vpop.permute.xlu0 %354  ;;  %v434_v54 = vsel %vm94_vm0, %v391_v43, 0.0  ;;  %v396_v63 = vadd.f32 %v395_v26, %v394_v15  ;;  %v409_v1 = vadd.f32 %v408_v28, %v407_v27  ;;  %v421_v47 = vsel %vm94_vm0, %v387_v40, 0.0 }
  0x8b   :  { %v1729_v55 = vadd.f32 %v360_v21, %v333_v7  ;;  %v1731_v56 = vadd.f32 %v360_v21, %v337_v32  ;;  %v1733_v57 = vadd.f32 %v360_v21, %v341_v36  ;;  %v1735_v58 = vadd.f32 %v355_v35, %v328_v38 }
  0x8c   :  { %v1737_v59 = vadd.f32 %v355_v35, %v332_v39  ;;  %v1739_v60 = vadd.f32 %v355_v35, %v336_v41  ;;  %v1741_v61 = vadd.f32 %v355_v35, %v340_v44  ;;  %v1745_v0 = vadd.f32 %v360_v21, %v329_v53  ;;  %v1765_v53 = vpop.permute.xlu2 %877 }
  0x8d   :  { %v393_v62 = vmul.f32 %v1733_v57, %v1733_v57  ;;  %v380_v2 = vmul.f32 %v1735_v58, %v1735_v58  ;;  %v385_v13 = vmul.f32 %v1729_v55, %v1729_v55  ;;  %v435_v50 = vadd.f32 %v434_v54, %v433_v46 }
  0x8e   :  { %v384_v3 = vmul.f32 %v1737_v59, %v1737_v59  ;;  %v388_v4 = vmul.f32 %v1739_v60, %v1739_v60  ;;  %v392_v11 = vmul.f32 %v1741_v61, %v1741_v61  ;;  %v381_v10 = vmul.f32 %v1745_v0, %v1745_v0 }
  0x8f   :  { %v389_v5 = vmul.f32 %v1731_v56, %v1731_v56  ;;  %v397_v51 = vsel %vm94_vm0, %v380_v2, 0.0  ;;  %v438_v9 = vsel %vm94_vm0, %v393_v62, 0.0  ;;  %v422_v20 = vadd.f32 %v421_v47, %v420_v45 }
  0x90   :  { %v410_v49 = vsel %vm94_vm0, %v384_v3, 0.0  ;;  %v436_v6 = vsel %vm94_vm0, %v392_v11, 0.0  ;;  %v423_v7 = vsel %vm94_vm0, %v388_v4, 0.0  ;;  %v398_v8 = vadd.f32 %v397_v51, %v396_v63 }
  0x91   :  { %v437_v48 = vadd.f32 %v436_v6, %v435_v50  ;;  %v411_v52 = vadd.f32 %v410_v49, %v409_v1  ;;  %v399_v16 = vsel %vm94_vm0, %v381_v10, 0.0  ;;  %v412_v34 = vsel %vm94_vm0, %v385_v13, 0.0 }
  0x92   :  { %v1769_v19 = vpop.permute.xlu0 %867  ;;  %v400_v29 = vadd.f32 %v399_v16, %v398_v8  ;;  %v424_v32 = vadd.f32 %v423_v7, %v422_v20  ;;  %v425_v36 = vsel %vm94_vm0, %v389_v5, 0.0 }
  0x93   :  { %v439_v22 = vadd.f32 %v438_v9, %v437_v48  ;;  %v413_v30 = vadd.f32 %v412_v34, %v411_v52 }
  0x94   :  { %v401_v42 = vrot.slane %v400_v29, 4  ;;  %v426_v39 = vadd.f32 %v425_v36, %v424_v32 }
  0x95   :  { %v440_v37 = vrot.slane %v439_v22, 4  ;;  %v414_v38 = vrot.slane %v413_v30, 4 }
  0x96   :  { %v402_v43 = vadd.f32 %v401_v42, %v400_v29  ;;  %v427_v46 = vrot.slane %v426_v39, 4 }
  0x97   :  { %v441_v41 = vadd.f32 %v440_v37, %v439_v22  ;;  %v415_v44 = vadd.f32 %v414_v38, %v413_v30 }
  0x98   :  { %v403_v15 = vrot.slane %v402_v43, 2  ;;  %v428_v26 = vadd.f32 %v427_v46, %v426_v39 }
  0x99   :  { %v442_v45 = vrot.slane %v441_v41, 2  ;;  %v416_v35 = vrot.slane %v415_v44, 2 }
  0x9a   :  { %v1776_v21 = vpop.permute.xlu0 %882  ;;  %v404_v28 = vadd.f32 %v403_v15, %v402_v43  ;;  %v429_v62 = vrot.slane %v428_v26, 2 }
  0x9b   :  { %v443_v27 = vadd.f32 %v442_v45, %v441_v41  ;;  %v417_v54 = vadd.f32 %v416_v35, %v415_v44 }
  0x9c   :  { %v405_v1 = vrot.slane %v404_v28, 1  ;;  %v430_v3 = vadd.f32 %v429_v62, %v428_v26 }
  0x9d   :  { %v444_v63 = vrot.slane %v443_v27, 1  ;;  %v418_v2 = vrot.slane %v417_v54, 1 }
  0x9e   :  { %v406_v11 = vadd.f32 %v405_v1, %v404_v28  ;;  %v431_v50 = vrot.slane %v430_v3, 1 }
  0x9f   :  { %v445_v4 = vadd.f32 %v444_v63, %v443_v27  ;;  %v419_v13 = vadd.f32 %v418_v2, %v417_v54 }
  0xa0   :  { %v432_v10 = vadd.f32 %v431_v50, %v430_v3  ;;  %vm453_vm14 = vcmp.eq.f32.partialorder %v406_v11, inf  ;;  %vm455_vm15 = vcmp.eq.f32.partialorder %v406_v11, 0.0  ;;  %v456_v41 = vand.u32 2147483648, %v406_v11 }
  0xa1   :  { %1262 = vrsqrt.f32 %v445_v4  ;;  %vm489_vm1 = vcmp.eq.f32.partialorder %v445_v4, inf  ;;  %v492_v46 = vand.u32 2147483648, %v445_v4  ;;  %vm465_vm2 = vcmp.eq.f32.partialorder %v419_v13, inf }
  0xa2   :  { %1264 = vrsqrt.f32 %v406_v11  ;;  %vm491_vm3 = vcmp.eq.f32.partialorder %v445_v4, 0.0  ;;  %v468_v26 = vand.u32 2147483648, %v419_v13  ;;  %vm467_vm4 = vcmp.eq.f32.partialorder %v419_v13, 0.0 }
  0xa3   :  { %1266 = vrsqrt.f32 %v419_v13  ;;  %vm477_vm5 = vcmp.eq.f32.partialorder %v432_v10, inf  ;;  %vm479_vm6 = vcmp.eq.f32.partialorder %v432_v10, 0.0 }
  0xa4   :  { %1268 = vrsqrt.f32 %v432_v10 }
  0xa7   :  { %v1263_v47 = vpop.eup %1262 }
  0xa8   :  { %v1265_v5 = vpop.eup %1264  ;;  %v483_v51 = vmul.f32 %v1263_v47, %v445_v4 }
  0xa9   :  { %v1267_v49 = vpop.eup %1266  ;;  %v447_v6 = vmul.f32 %v1265_v5, %v406_v11 }
  0xaa   :  { %v459_v7 = vmul.f32 %v1267_v49, %v419_v13  ;;  %v484_v48 = vmul.f32 %v1263_v47, %v483_v51  ;;  %v1269_v52 = vpop.eup %1268 }
  0xab   :  { %v448_v8 = vmul.f32 %v1265_v5, %v447_v6  ;;  %v471_v34 = vmul.f32 %v1269_v52, %v432_v10 }
  0xac   :  { %v460_v9 = vmul.f32 %v1267_v49, %v459_v7  ;;  %v485_v16 = vmul.f32 0.5, %v484_v48 }
  0xad   :  { %v449_v20 = vmul.f32 0.5, %v448_v8  ;;  %v472_v32 = vmul.f32 %v1269_v52, %v471_v34 }
  0xae   :  { %v461_v22 = vmul.f32 0.5, %v460_v9  ;;  %v486_v29 = vsub.f32 1.5, %v485_v16 }
  0xaf   :  { %v450_v30 = vsub.f32 1.5, %v449_v20  ;;  %v473_v38 = vmul.f32 0.5, %v472_v32 }
  0xb0   :  { %v462_v36 = vsub.f32 1.5, %v461_v22  ;;  %v487_v37 = vmul.f32 %v1263_v47, %v486_v29 }
  0xb1   :  { %v451_v42 = vmul.f32 %v1265_v5, %v450_v30  ;;  %v474_v45 = vsub.f32 1.5, %v473_v38 }
  0xb2   :  { %v463_v39 = vmul.f32 %v1267_v49, %v462_v36  ;;  %v488_v43 = vmul.f32 %v487_v37, %v445_v4 }
  0xb3   :  { %v452_v44 = vmul.f32 %v451_v42, %v406_v11  ;;  %v475_v54 = vmul.f32 %v1269_v52, %v474_v45 }
  0xb4   :  { %v464_v15 = vmul.f32 %v463_v39, %v419_v13  ;;  %v490_v35 = vsel %vm489_vm1, %v445_v4, %v488_v43  ;;  %v480_v4 = vand.u32 2147483648, %v432_v10 }
  0xb5   :  { %v454_v27 = vsel %vm453_vm14, %v406_v11, %v452_v44  ;;  %v493_v28 = vsel %vm491_vm3, %v492_v46, %v490_v35  ;;  %v476_v47 = vmul.f32 %v475_v54, %v432_v10 }
  0xb6   :  { %v466_v62 = vsel %vm465_vm2, %v419_v13, %v464_v15  ;;  %v457_v63 = vsel %vm455_vm15, %v456_v41, %v454_v27  ;;  %v1781_v1 = vadd.f32 1e-08, %v493_v28 }
  0xb7   :  { %v469_v2 = vsel %vm467_vm4, %v468_v26, %v466_v62  ;;  %v494_v3 = vadd.f32 1e-08, %v457_v63  ;;  %v478_v5 = vsel %vm477_vm5, %v432_v10, %v476_v47  ;;  %v1872_v63 = vld [vmem:[%s2148_s2 + $0x40] sm:$0xff] }
  0xb8   :  { %v495_v50 = vadd.f32 1e-08, %v469_v2  ;;  %1270 = vrcp.f32 %v1781_v1  ;;  %v481_v51 = vsel %vm479_vm6, %v480_v4, %v478_v5  ;;  %vm557_vm7 = vweird.f32 %v1781_v1 }
  0xb9   :  { %1272 = vrcp.f32 %v494_v3  ;;  %v1786_v13 = vadd.f32 1e-08, %v481_v51  ;;  %v507_v16 = vand.u32 2147483647, %v494_v3  ;;  %v509_v20 = vand.u32 2147483648, %v494_v3 }
  0xba   :  { %1274 = vrcp.f32 %v495_v50  ;;  %v525_v22 = vand.u32 2147483647, %v495_v50  ;;  %v527_v29 = vand.u32 2147483648, %v495_v50  ;;  %vm503_vm10 = vweird.f32 %v494_v3 }
  0xbb   :  { %1276 = vrcp.f32 %v1786_v13  ;;  %v561_v36 = vand.u32 2147483647, %v1781_v1  ;;  %vm521_vm11 = vweird.f32 %v495_v50  ;;  %vm508_vm12 = vcmp.eq.f32.partialorder %v507_v16, 8.507059e+37 }
  0xbc   :  { %v510_v38 = vor.u32 1.1754944e-38, %v509_v20  ;;  %vm526_vm1 = vcmp.eq.f32.partialorder %v525_v22, 8.507059e+37  ;;  %v528_v44 = vor.u32 1.1754944e-38, %v527_v29  ;;  %v563_v45 = vand.u32 2147483648, %v1781_v1 }
  0xbd   :  { %v543_v27 = vand.u32 2147483647, %v1786_v13  ;;  %v545_v2 = vand.u32 2147483648, %v1786_v13  ;;  %vm562_vm4 = vcmp.eq.f32.partialorder %v561_v36, 8.507059e+37  ;;  %vm539_vm5 = vweird.f32 %v1786_v13 }
  0xbe   :  { %v1784_v49 = vpop.eup %1270  ;;  %v564_v5 = vor.u32 1.1754944e-38, %v563_v45 }
  0xbf   :  { %v1273_v11 = vpop.eup %1272  ;;  %v553_v6 = vmul.f32 %v1784_v49, %v1781_v1  ;;  %vm558_vm14 = vweird.f32 %v1784_v49 }
  0xc0   :  { %v1275_v7 = vpop.eup %1274  ;;  %v499_v48 = vmul.f32 %v1273_v11, %v494_v3  ;;  %vm504_vm8 = vweird.f32 %v1273_v11  ;;  %vm1807_vm2 = vmor %vm557_vm7, %vm558_vm14  ;;  %vm544_vm7 = vcmp.eq.f32.partialorder %v543_v27, 8.507059e+37 }
  0xc1   :  { %v517_v8 = vmul.f32 %v1275_v7, %v495_v50  ;;  %v554_v52 = vsub.f32 1.0, %v553_v6  ;;  %vm522_vm9 = vweird.f32 %v1275_v7  ;;  %v1277_v37 = vpop.eup %1276  ;;  %vm505_vm13 = vmor %vm503_vm10, %vm504_vm8  ;;  %v546_v6 = vor.u32 1.1754944e-38, %v545_v2  ;;  %v1878_v2 = vld [vmem:[%s2148_s2 + $0x38] sm:$0xff] }
  0xc2   :  { %v500_v9 = vsub.f32 1.0, %v499_v48  ;;  %v535_v43 = vmul.f32 %v1277_v37, %v1786_v13  ;;  %vm523_vm15 = vmor %vm521_vm11, %vm522_vm9  ;;  %vm540_vm3 = vweird.f32 %v1277_v37  ;;  %2162 = vst [vmem:[#allocation8_spill] sm:$0xff] %v1878_v2  ;;  %vm734_vm8 = vcmask 811008  }
  0xc3   :  { %v518_v34 = vsub.f32 1.0, %v517_v8  ;;  %v555_v10 = vmul.f32 %v1784_v49, %v554_v52  ;;  %vm541_vm6 = vmor %vm539_vm5, %vm540_vm3 }
  0xc4   :  { %v501_v30 = vmul.f32 %v1273_v11, %v500_v9  ;;  %v536_v26 = vsub.f32 1.0, %v535_v43 }
  0xc5   :  { %v519_v32 = vmul.f32 %v1275_v7, %v518_v34  ;;  %v556_v41 = vadd.f32 %v1784_v49, %v555_v10 }
  0xc6   :  { %v502_v42 = vadd.f32 %v1273_v11, %v501_v30  ;;  %v537_v47 = vmul.f32 %v1277_v37, %v536_v26 }
  0xc7   :  { %v520_v39 = vadd.f32 %v1275_v7, %v519_v32  ;;  %v560_v50 = vsel %vm1807_vm2, %v1784_v49, %v556_v41 }
  0xc8   :  { %v506_v46 = vsel %vm505_vm13, %v1273_v11, %v502_v42  ;;  %v538_v11 = vadd.f32 %v1277_v37, %v537_v47  ;;  %v565_v49 = vsel %vm562_vm4, %v564_v5, %v560_v50  ;;  %v1887_v50 = vpop.permute.xlu1 %872  ;;  %v1889_v47 = vpop.permute.xlu2 %897 }
  0xc9   :  { %v524_v15 = vsel %vm523_vm15, %v1275_v7, %v520_v39  ;;  %v511_v35 = vsel %vm508_vm12, %v510_v38, %v506_v46  ;;  %v1829_v52 = vmul.f32 %v565_v49, %v1692_v33  ;;  %v568_v36 = vmul.f32 %v565_v49, %v1741_v61 }
  0xca   :  { %v529_v28 = vsel %vm526_vm1, %v528_v44, %v524_v15  ;;  %v1800_v54 = vmul.f32 %v511_v35, %v1702_v23  ;;  %v1803_v62 = vmul.f32 %v511_v35, %v1694_v14  ;;  %v542_v7 = vsel %vm541_vm6, %v1277_v37, %v538_v11 }
  0xcb   :  { %v1813_v3 = vmul.f32 %v529_v28, %v1696_v18  ;;  %v547_v48 = vsel %vm544_vm7, %v546_v6, %v542_v7  ;;  %v1826_v8 = vmul.f32 %v529_v28, %v1704_v24  ;;  %v606_v20 = vsel %vm94_vm0, %v1829_v52, 0.0 }
  0xcc   :  { %v573_v4 = vsel %vm94_vm0, %v1800_v54, 0.0  ;;  %v570_v1 = vsel %vm94_vm0, %v1803_v62, 0.0  ;;  %v1832_v9 = vmul.f32 %v547_v48, %v1712_v31  ;;  %v514_v34 = vmul.f32 %v511_v35, %v1735_v58 }
  0xcd   :  { %v582_v51 = vsel %vm94_vm0, %v1813_v3, 0.0  ;;  %574 = vadd.xlane.f32.xlu0 %v573_v4  ;;  %571 = vadd.xlane.f32.xlu2 %v570_v1  ;;  %v585_v13 = vsel %vm94_vm0, %v1826_v8, 0.0  ;;  %v548_v10 = vmul.f32 %v547_v48, %v1690_v12  ;;  %v1843_v22 = vmul.f32 %v529_v28, %v1737_v59  ;;  %v1891_v4 = vpop.permute.xlu0 %892 }
  0xce   :  { %583 = vadd.xlane.f32.xlu1 %v582_v51  ;;  %v597_v16 = vsel %vm94_vm0, %v1832_v9, 0.0  ;;  %v576_v29 = vsel %vm94_vm0, %v514_v34, 0.0  ;;  %v567_v37 = vmul.f32 %v565_v49, %v1706_v25  ;;  %v515_v42 = vmul.f32 %v511_v35, %v1745_v0 }
  0xcf   :  { %v594_v30 = vsel %vm94_vm0, %v548_v10, 0.0  ;;  %v588_v32 = vsel %vm94_vm0, %v1843_v22, 0.0  ;;  %v612_v38 = vsel %vm94_vm0, %v568_v36, 0.0  ;;  %v551_v43 = vmul.f32 %v547_v48, %v1731_v56 }
  0xd0   :  { %v609_v39 = vsel %vm94_vm0, %v567_v37, 0.0  ;;  %v579_v41 = vsel %vm94_vm0, %v515_v42, 0.0  ;;  %v550_v44 = vmul.f32 %v547_v48, %v1739_v60  ;;  %v1858_v46 = vmul.f32 %v565_v49, %v1733_v57  ;;  %v1893_v1 = vpop.permute.xlu1 %887 }
  0xd1   :  { %v603_v45 = vsel %vm94_vm0, %v551_v43, 0.0  ;;  %v1865_v26 = vmul.f32 %v529_v28, %v1729_v55  ;;  %v1884_v28 = vld [vmem:[%s2148_s2 + $0x48] sm:$0xff] }
  0xd2   :  { %v600_v15 = vsel %vm94_vm0, %v550_v44, 0.0  ;;  %v615_v35 = vsel %vm94_vm0, %v1858_v46, 0.0  ;;  %2163 = vst [vmem:[#allocation9_spill] sm:$0xff] %v1884_v28 }
  0xd3   :  { %v591_v27 = vsel %vm94_vm0, %v1865_v26, 0.0 }
  0xd5   :  { %598 = vadd.xlane.f32.xlu0 %v597_v16  ;;  %586 = vadd.xlane.f32.xlu2 %v585_v13 }
  0xd6   :  { %607 = vadd.xlane.f32.xlu1 %v606_v20 }
  0xdd   :  { %577 = vadd.xlane.f32.xlu0 %v576_v29  ;;  %595 = vadd.xlane.f32.xlu2 %v594_v30 }
  0xde   :  { %589 = vadd.xlane.f32.xlu1 %v588_v32 }
  0xe5   :  { %613 = vadd.xlane.f32.xlu0 %v612_v38  ;;  %610 = vadd.xlane.f32.xlu2 %v609_v39 }
  0xe6   :  { %580 = vadd.xlane.f32.xlu1 %v579_v41 }
  0xed   :  { %604 = vadd.xlane.f32.xlu0 %v603_v45  ;;  %601 = vadd.xlane.f32.xlu2 %v600_v15 }
  0xee   :  { %616 = vadd.xlane.f32.xlu1 %v615_v35 }
  0xf5   :  { %592 = vadd.xlane.f32.xlu2 %v591_v27 }
 0x101   :  { %907 = vperm.xlu0 %1249, %v1872_v63  }
 0x107   :  { %902 = vperm.xlu1 %1250, %v1878_v2  }
 0x10d   :  { %912 = vperm.xlu2 %1251, %v1884_v28  }
 0x140   :  { %v572_v5 = vpop.xlane.xlu2 %571  ;;  %v575_v51 = vpop.xlane.xlu0 %574 }
 0x141   :  { %v584_v11 = vpop.xlane.xlu1 %583  ;;  %v618_v20 = vmul.f32 %v572_v5, %v1803_v62  ;;  %v619_v29 = vmul.f32 %v575_v51, %v1800_v54 }
 0x143   :  { %v634_v32 = vsel %vm94_vm0, %v618_v20, 0.0  ;;  %v635_v38 = vsel %vm94_vm0, %v619_v29, 0.0 }
 0x144   :  { %v636_v15 = vadd.f32 %v635_v38, %v634_v32 }
 0x148   :  { %v587_v49 = vpop.xlane.xlu2 %586  ;;  %v599_v6 = vpop.xlane.xlu0 %598 }
 0x149   :  { %v608_v7 = vpop.xlane.xlu1 %607 }
 0x14a   :  { %v630_v40 = vmul.f32 %v608_v7, %v1829_v52 }
 0x14c   :  { %v673_v51 = vsel %vm94_vm0, %v630_v40, 0.0 }
 0x150   :  { %v596_v48 = vpop.xlane.xlu2 %595  ;;  %v578_v16 = vpop.xlane.xlu0 %577 }
 0x151   :  { %v590_v13 = vpop.xlane.xlu1 %589  ;;  %v620_v30 = vmul.f32 %v578_v16, %v514_v34  ;;  %v626_v2 = vmul.f32 %v596_v48, %v548_v10  ;;  %v627_v34 = vmul.f32 %v599_v6, %v1832_v9  ;;  %v622_v9 = vmul.f32 %v584_v11, %v1813_v3 }
 0x153   :  { %v637_v39 = vsel %vm94_vm0, %v620_v30, 0.0  ;;  %v660_v20 = vsel %vm94_vm0, %v626_v2, 0.0  ;;  %v661_v10 = vsel %vm94_vm0, %v627_v34, 0.0  ;;  %v624_v2 = vmul.f32 %v590_v13, %v1843_v22 }
 0x154   :  { %v638_v28 = vadd.f32 %v637_v39, %v636_v15 }
 0x158   :  { %v611_v41 = vpop.xlane.xlu2 %610  ;;  %v614_v45 = vpop.xlane.xlu0 %613 }
 0x159   :  { %v581_v35 = vpop.xlane.xlu1 %580  ;;  %v631_v27 = vmul.f32 %v611_v41, %v567_v37  ;;  %v632_v16 = vmul.f32 %v614_v45, %v568_v36  ;;  %v623_v37 = vmul.f32 %v587_v49, %v1826_v8  ;;  %v647_v45 = vsel %vm94_vm0, %v622_v9, 0.0 }
 0x15a   :  { %v621_v17 = vmul.f32 %v581_v35, %v515_v42 }
 0x15b   :  { %v674_v54 = vsel %vm94_vm0, %v631_v27, 0.0  ;;  %v676_v40 = vsel %vm94_vm0, %v632_v16, 0.0  ;;  %v648_v41 = vsel %vm94_vm0, %v623_v37, 0.0 }
 0x15c   :  { %v639_v62 = vsel %vm94_vm0, %v621_v17, 0.0  ;;  %v675_v30 = vadd.f32 %v674_v54, %v673_v51  ;;  %v649_v13 = vadd.f32 %v648_v41, %v647_v45 }
 0x15d   :  { %v640_v5 = vadd.f32 %v639_v62, %v638_v28  ;;  %v662_v28 = vadd.f32 %v661_v10, %v660_v20 }
 0x15e   :  { %v677_v38 = vadd.f32 %v676_v40, %v675_v30 }
 0x15f   :  { %v641_v29 = vrot.slane %v640_v5, 4 }
 0x160   :  { %v602_v52 = vpop.xlane.xlu2 %601  ;;  %v605_v42 = vpop.xlane.xlu0 %604 }
 0x161   :  { %v642_v7 = vadd.f32 %v641_v29, %v640_v5  ;;  %v617_v17 = vpop.xlane.xlu1 %616  ;;  %v628_v48 = vmul.f32 %v602_v52, %v550_v44  ;;  %v629_v32 = vmul.f32 %v605_v42, %v551_v43 }
 0x162   :  { %v633_v36 = vmul.f32 %v617_v17, %v1858_v46  ;;  %v650_v46 = vsel %vm94_vm0, %v624_v2, 0.0 }
 0x163   :  { %v643_v6 = vrot.slane %v642_v7, 2  ;;  %v663_v8 = vsel %vm94_vm0, %v628_v48, 0.0  ;;  %v665_v43 = vsel %vm94_vm0, %v629_v32, 0.0  ;;  %v651_v5 = vadd.f32 %v650_v46, %v649_v13 }
 0x164   :  { %v678_v49 = vsel %vm94_vm0, %v633_v36, 0.0  ;;  %v664_v39 = vadd.f32 %v663_v8, %v662_v28 }
 0x165   :  { %v679_v44 = vadd.f32 %v678_v49, %v677_v38  ;;  %v644_v3 = vadd.f32 %v643_v6, %v642_v7 }
 0x166   :  { %v666_v11 = vadd.f32 %v665_v43, %v664_v39  ;;  %v1944_v43 = vld [vmem:[%s2148_s2 + $0x50] sm:$0xff] }
 0x167   :  { %v680_v15 = vrot.slane %v679_v44, 4  ;;  %v645_v22 = vrot.slane %v644_v3, 1  ;;  %2164 = vst [vmem:[#allocation10_spill] sm:$0xff] %v1944_v43 }
 0x168   :  { %v667_v35 = vrot.slane %v666_v11, 4  ;;  %v593_v27 = vpop.xlane.xlu2 %592 }
 0x169   :  { %v681_v62 = vadd.f32 %v680_v15, %v679_v44  ;;  %v625_v54 = vmul.f32 %v593_v27, %v1865_v26  ;;  %v1919_v34 = vadd.f32 %v645_v22, %v644_v3  ;;  %v1939_v44 = vld [vmem:[%s2148_s2 + $0x60] sm:$0xff]  ;;  %v1951_v3 = vld [vmem:[%s2148_s2 + $0x58] sm:$0xff] }
 0x16a   :  { %v668_v51 = vadd.f32 %v667_v35, %v666_v11  ;;  %2165 = vst [vmem:[#allocation11_spill] sm:$0xff] %v1951_v3 }
 0x16b   :  { %v682_v16 = vrot.slane %v681_v62, 2  ;;  %v652_v20 = vsel %vm94_vm0, %v625_v54, 0.0  ;;  %v686_v29 = vsel %vm94_vm0, %v1919_v34, -inf  ;;  %v698_v39 = vsel %vm94_vm0, %v1919_v34, inf }
 0x16c   :  { %v669_v30 = vrot.slane %v668_v51, 2  ;;  %v653_v37 = vadd.f32 %v652_v20, %v651_v5  ;;  %687 = vmax.xlane.f32.xlu2 %v686_v29 }
 0x16d   :  { %v683_v52 = vadd.f32 %v682_v16, %v681_v62 }
 0x16e   :  { %v654_v42 = vrot.slane %v653_v37, 4  ;;  %v670_v10 = vadd.f32 %v669_v30, %v668_v51 }
 0x16f   :  { %v684_v7 = vrot.slane %v683_v52, 1 }
 0x170   :  { %v655_v17 = vadd.f32 %v654_v42, %v653_v37  ;;  %v671_v48 = vrot.slane %v670_v10, 1  ;;  %v1954_v11 = vpop.permute.xlu2 %912 }
 0x171   :  { %v1924_v26 = vadd.f32 %v684_v7, %v683_v52 }
 0x172   :  { %v656_v32 = vrot.slane %v655_v17, 2  ;;  %v672_v9 = vadd.f32 %v671_v48, %v670_v10  ;;  %v53_v10 = vld [vmem:[%s2151_s5] sm:$0x1] }
 0x173   :  { %v695_v28 = vsel %vm94_vm0, %v1924_v26, -inf  ;;  %v707_v41 = vsel %vm94_vm0, %v1924_v26, inf  ;;  %v1958_v15 = vpop.permute.xlu0 %907 }
 0x174   :  { %696 = vmax.xlane.f32.xlu2 %v695_v28  ;;  %v692_v40 = vsel %vm94_vm0, %v672_v9, -inf  ;;  %v657_v36 = vadd.f32 %v656_v32, %v655_v17  ;;  %v704_v8 = vsel %vm94_vm0, %v672_v9, inf }
 0x175   :  { %693 = vmax.xlane.f32.xlu1 %v692_v40 }
 0x176   :  { %v658_v2 = vrot.slane %v657_v36, 1 }
 0x178   :  { %v659_v6 = vadd.f32 %v658_v2, %v657_v36 }
 0x179   :  { %v1956_v46 = vpop.permute.xlu1 %902 }
 0x17a   :  { %v689_v38 = vsel %vm94_vm0, %v659_v6, -inf  ;;  %v701_v49 = vsel %vm94_vm0, %v659_v6, inf }
 0x17b   :  { %690 = vmax.xlane.f32.xlu0 %v689_v38 }
 0x17c   :  { %705 = vmin.xlane.f32.xlu2 %v704_v8 }
 0x17d   :  { %702 = vmin.xlane.f32.xlu1 %v701_v49 }
 0x183   :  { %699 = vmin.xlane.f32.xlu0 %v698_v39 }
 0x18b   :  { %708 = vmin.xlane.f32.xlu0 %v707_v41 }
 0x194   :  { %927 = vperm.xlu2 %1251, %v1939_v44  }
 0x196   :  { %917 = vperm.xlu1 %1250, %v1944_v43  }
 0x19f   :  { %922 = vperm.xlu0 %1249, %v1951_v3  }
 0x1df   :  { %v688_v45 = vpop.xlane.xlu2 %687 }
 0x1e7   :  { %v697_v22 = vpop.xlane.xlu2 %696 }
 0x1e8   :  { %v694_v13 = vpop.xlane.xlu1 %693 }
 0x1ee   :  { %v691_v35 = vpop.xlane.xlu0 %690 }
 0x1ef   :  { %v706_v27 = vpop.xlane.xlu2 %705 }
 0x1f0   :  { %v716_v62 = vsub.f32 %v694_v13, %v706_v27  ;;  %v703_v54 = vpop.xlane.xlu1 %702  ;;  %v712_v30 = vsub.f32 %v672_v9, %v706_v27  ;;  %v1984_v27 = vld [vmem:[%s2148_s2 + $0x70] sm:$0xff] }
 0x1f1   :  { %v715_v5 = vsub.f32 %v691_v35, %v703_v54  ;;  %v711_v42 = vsub.f32 %v659_v6, %v703_v54 }
 0x1f2   :  { %v720_v51 = vadd.f32 1e-08, %v716_v62  ;;  %v1990_v62 = vld [vmem:[%s2148_s2 + $0x78] sm:$0xff] }
 0x1f3   :  { %v719_v16 = vadd.f32 1e-08, %v715_v5  ;;  %2166 = vst [vmem:[#allocation12_spill] sm:$0xff] %v1990_v62 }
 0x1f4   :  { %1278 = vrcp.f32 %v720_v51  ;;  %v747_v51 = vstv %s43_s13  ;;  %s1225_s13 = sshll.u32 %s2154_s8, 4  ;;  %s1226_s13 = int_to_ptr.hbm [resolvable:$true] %s1225_s13 }
 0x1f5   :  { %1280 = vrcp.f32 %v719_v16 }
 0x1f6   :  { %v700_v20 = vpop.xlane.xlu0 %699 }
 0x1f7   :  { %v714_v29 = vsub.f32 %v688_v45, %v700_v20  ;;  %v710_v2 = vsub.f32 %v1919_v34, %v700_v20  ;;  %v2001_v5 = vpop.permute.xlu2 %927 }
 0x1f9   :  { %v718_v37 = vadd.f32 1e-08, %v714_v29 }
 0x1fa   :  { %v1279_v52 = vpop.eup %1278 }
 0x1fb   :  { %v1281_v7 = vpop.eup %1280  ;;  %v1963_v17 = vmul.f32 %v1279_v52, %v712_v30  ;;  %1282 = vrcp.f32 %v718_v37 }
 0x1fc   :  { %v1965_v48 = vmul.f32 %v1281_v7, %v711_v42 }
 0x1fd   :  { %v732_v32 = vmul.f32 %v1963_v17, %v53_v10 }
 0x1fe   :  { %v709_v28 = vpop.xlane.xlu0 %708  ;;  %v731_v40 = vmul.f32 %v1965_v48, %v53_v10 }
 0x1ff   :  { %v717_v9 = vsub.f32 %v697_v22, %v709_v28  ;;  %v741_v36 = vsel %vm734_vm8, %v732_v32, 0.0  ;;  %v713_v45 = vsub.f32 %v1924_v26, %v709_v28  ;;  %v1996_v26 = vld [vmem:[%s2148_s2 + $0x68] sm:$0xff] }
 0x200   :  { %742 = vadd.xlane.f32.xlu0 %v741_v36  ;;  %v738_v6 = vsel %vm734_vm8, %v731_v40, 0.0 }
 0x201   :  { %v1283_v38 = vpop.eup %1282  ;;  %v721_v8 = vadd.f32 1e-08, %v717_v9  ;;  %739 = vadd.xlane.f32.xlu2 %v738_v6 }
 0x202   :  { %v1972_v49 = vmul.f32 %v1283_v38, %v710_v2 }
 0x203   :  { %1284 = vrcp.f32 %v721_v8 }
 0x204   :  { %v730_v39 = vmul.f32 %v1972_v49, %v53_v10 }
 0x206   :  { %v735_v41 = vsel %vm734_vm8, %v730_v39, 0.0 }
 0x207   :  { %736 = vadd.xlane.f32.xlu1 %v735_v41 }
 0x208   :  { %v2003_v16 = vpop.permute.xlu1 %917 }
 0x209   :  { %v1285_v22 = vpop.eup %1284 }
 0x20a   :  { %v1977_v13 = vmul.f32 %v1285_v22, %v713_v45 }
 0x20c   :  { %v733_v34 = vmul.f32 %v1977_v13, %v53_v10 }
 0x20e   :  { %v744_v35 = vsel %vm734_vm8, %v733_v34, 0.0 }
 0x20f   :  { %745 = vadd.xlane.f32.xlu1 %v744_v35 }
 0x211   :  { %v1999_v54 = vpop.permute.xlu0 %922 }
 0x214   :  { %937 = vperm.xlu0 %1249, %v1984_v27  }
 0x219   :  { %942 = vperm.xlu2 %1251, %v1990_v62  }
 0x228   :  { %932 = vperm.xlu1 %1250, %v1996_v26  }
 0x273   :  { %v743_v20 = vpop.xlane.xlu0 %742 }
 0x274   :  { %v750_v29 = vadd.f32 %v747_v51, %v743_v20  ;;  %v740_v30 = vpop.xlane.xlu2 %739 }
 0x275   :  { %v749_v37 = vadd.f32 %v747_v51, %v740_v30 }
 0x276   :  { %v1241_v52 = vmul.f32 -1.442695, %v750_v29 }
 0x277   :  { %v1240_v42 = vmul.f32 -1.442695, %v749_v37 }
 0x278   :  { %1286 = vpow2.f32 %v1241_v52 }
 0x279   :  { %1288 = vpow2.f32 %v1240_v42 }
 0x27a   :  { %v737_v10 = vpop.xlane.xlu1 %736 }
 0x27b   :  { %v748_v7 = vadd.f32 %v747_v51, %v737_v10 }
 0x27d   :  { %v1239_v32 = vmul.f32 -1.442695, %v748_v7 }
 0x27e   :  { %v1287_v28 = vpop.eup %1286 }
 0x27f   :  { %v1289_v40 = vpop.eup %1288  ;;  %v766_v9 = vadd.f32 1.0, %v1287_v28  ;;  %1290 = vpow2.f32 %v1239_v32 }
 0x280   :  { %v765_v36 = vadd.f32 1.0, %v1289_v40  ;;  %v828_v40 = vstv %s1238_s14  ;;  %s1361_s14 = smov 16  }
 0x281   :  { %1292 = vrcp.f32 %v766_v9  ;;  %v809_v29 = vand.u32 2147483648, %v766_v9  ;;  %v807_v37 = vand.u32 2147483647, %v766_v9  ;;  %vm803_vm11 = vweird.f32 %v766_v9 }
 0x282   :  { %1294 = vrcp.f32 %v765_v36  ;;  %v746_v2 = vpop.xlane.xlu1 %745  ;;  %v794_v52 = vand.u32 2147483648, %v765_v36  ;;  %vm788_vm13 = vweird.f32 %v765_v36 }
 0x283   :  { %v751_v6 = vadd.f32 %v747_v51, %v746_v2  ;;  %v792_v51 = vand.u32 2147483647, %v765_v36  ;;  %vm808_vm14 = vcmp.eq.f32.partialorder %v807_v37, 8.507059e+37 }
 0x285   :  { %v1291_v38 = vpop.eup %1290  ;;  %v1242_v8 = vmul.f32 -1.442695, %v751_v6  ;;  %v810_v6 = vor.u32 1.1754944e-38, %v809_v29  ;;  %vm793_vm1 = vcmp.eq.f32.partialorder %v792_v51, 8.507059e+37 }
 0x286   :  { %v764_v39 = vadd.f32 1.0, %v1291_v38 }
 0x287   :  { %v1293_v41 = vpop.eup %1292  ;;  %1296 = vpow2.f32 %v1242_v8 }
 0x288   :  { %v1295_v45 = vpop.eup %1294  ;;  %v799_v22 = vmul.f32 %v1293_v41, %v766_v9  ;;  %1298 = vrcp.f32 %v764_v39  ;;  %vm804_vm9 = vweird.f32 %v1293_v41  ;;  %v777_v43 = vand.u32 2147483647, %v764_v39 }
 0x289   :  { %v784_v34 = vmul.f32 %v1295_v45, %v765_v36  ;;  %vm789_vm10 = vweird.f32 %v1295_v45  ;;  %vm805_vm12 = vmor %vm803_vm11, %vm804_vm9  ;;  %vm773_vm3 = vweird.f32 %v764_v39 }
 0x28a   :  { %v800_v35 = vsub.f32 1.0, %v799_v22  ;;  %vm790_vm15 = vmor %vm788_vm13, %vm789_vm10  ;;  %v795_v22 = vor.u32 1.1754944e-38, %v794_v52  ;;  %vm778_vm5 = vcmp.eq.f32.partialorder %v777_v43, 8.507059e+37 }
 0x28b   :  { %v785_v20 = vsub.f32 1.0, %v784_v34 }
 0x28c   :  { %v801_v30 = vmul.f32 %v1293_v41, %v800_v35 }
 0x28d   :  { %v1297_v42 = vpop.eup %1296  ;;  %v786_v10 = vmul.f32 %v1295_v45, %v785_v20 }
 0x28e   :  { %v1299_v7 = vpop.eup %1298  ;;  %v767_v32 = vadd.f32 1.0, %v1297_v42  ;;  %v802_v28 = vadd.f32 %v1293_v41, %v801_v30  ;;  %v779_v30 = vand.u32 2147483648, %v764_v39 }
 0x28f   :  { %v769_v2 = vmul.f32 %v1299_v7, %v764_v39  ;;  %v787_v38 = vadd.f32 %v1295_v45, %v786_v10  ;;  %vm774_vm2 = vweird.f32 %v1299_v7 }
 0x290   :  { %1300 = vrcp.f32 %v767_v32  ;;  %v806_v8 = vsel %vm805_vm12, %v1293_v41, %v802_v28  ;;  %vm775_vm4 = vmor %vm773_vm3, %vm774_vm2  ;;  %v780_v52 = vor.u32 1.1754944e-38, %v779_v30  ;;  %vm818_vm7 = vweird.f32 %v767_v32 }
 0x291   :  { %v770_v34 = vsub.f32 1.0, %v769_v2  ;;  %v811_v35 = vsel %vm808_vm14, %v810_v6, %v806_v8  ;;  %v791_v20 = vsel %vm790_vm15, %v1295_v45, %v787_v38  ;;  %v822_v8 = vand.u32 2147483647, %v767_v32 }
 0x292   :  { %v831_v3 = vmul.f32 %v828_v40, %v811_v35  ;;  %v796_v42 = vsel %vm793_vm1, %v795_v22, %v791_v20 }
 0x293   :  { %v830_v9 = vmul.f32 %v828_v40, %v796_v42  ;;  %v771_v62 = vmul.f32 %v1299_v7, %v770_v34  ;;  %vm823_vm10 = vcmp.eq.f32.partialorder %v822_v8, 8.507059e+37 }
 0x294   :  { %v835_v29 = vsub.f32 %v1963_v17, %v831_v3 }
 0x295   :  { %v834_v36 = vsub.f32 %v1965_v48, %v830_v9  ;;  %v772_v41 = vadd.f32 %v1299_v7, %v771_v62  ;;  %v824_v48 = vand.u32 2147483648, %v767_v32 }
 0x296   :  { %v1301_v37 = vpop.eup %1300  ;;  %v2008_v10 = vmax.f32 %v835_v29, 0.0  ;;  %v2020_v29 = vpop.permute.xlu0 %937 }
 0x297   :  { %v814_v45 = vmul.f32 %v1301_v37, %v767_v32  ;;  %v838_v51 = vmax.f32 %v834_v36, 0.0  ;;  %v776_v28 = vsel %vm775_vm4, %v1299_v7, %v772_v41  ;;  %vm819_vm6 = vweird.f32 %v1301_v37  ;;  %v2022_v32 = vpop.permute.xlu2 %942 }
 0x298   :  { %v847_v2 = vsel %vm734_vm8, %v2008_v10, 0.0  ;;  %v781_v6 = vsel %vm778_vm5, %v780_v52, %v776_v28  ;;  %vm820_vm9 = vmor %vm818_vm7, %vm819_vm6  ;;  %v825_v43 = vor.u32 1.1754944e-38, %v824_v48 }
 0x299   :  { %v815_v38 = vsub.f32 1.0, %v814_v45  ;;  %848 = vadd.xlane.f32.xlu1 %v847_v2  ;;  %v844_v3 = vsel %vm734_vm8, %v838_v51, 0.0  ;;  %v829_v17 = vmul.f32 %v828_v40, %v781_v6 }
 0x29a   :  { %845 = vadd.xlane.f32.xlu0 %v844_v3  ;;  %v2024_v41 = vpop.permute.xlu1 %932  ;;  %v945_v3 = vsub.f32 %v1694_v14, %v1769_v19  ;;  %v949_v14 = vsub.f32 %v1696_v18, %v1893_v1 }
 0x29b   :  { %v833_v62 = vsub.f32 %v1972_v49, %v829_v17  ;;  %v816_v39 = vmul.f32 %v1301_v37, %v815_v38  ;;  %v946_v38 = vsub.f32 %v1702_v23, %v1887_v50  ;;  %v950_v23 = vsub.f32 %v1704_v24, %v1891_v4 }
 0x29c   :  { %v953_v24 = vsub.f32 %v1690_v12, %v1958_v15  ;;  %v952_v4 = vsub.f32 %v1729_v55, %v1956_v46  ;;  %v955_v55 = vsub.f32 %v1739_v60, %v2003_v16  ;;  %v956_v46 = vsub.f32 %v1731_v56, %v1999_v54 }
 0x29d   :  { %v837_v22 = vmax.f32 %v833_v62, 0.0  ;;  %v817_v34 = vadd.f32 %v1301_v37, %v816_v39  ;;  %v2167_v62 = vsub.f32 %v1735_v58, %v1765_v53  ;;  %v959_v56 = vsub.f32 %v1741_v61, %v2020_v29 }
 0x29e   :  { %v960_v61 = vsub.f32 %v1733_v57, %v2022_v32  ;;  %v1312_v32 = vld [vmem:[%s2148_s2] sm:$0xff] }
 0x29f   :  { %v841_v7 = vsel %vm734_vm8, %v837_v22, 0.0  ;;  %v821_v35 = vsel %vm820_vm9, %v1301_v37, %v817_v34 }
 0x2a0   :  { %842 = vadd.xlane.f32.xlu2 %v841_v7  ;;  %v826_v20 = vsel %vm823_vm10, %v825_v43, %v821_v35 }
 0x2a1   :  { %v832_v42 = vmul.f32 %v828_v40, %v826_v20 }
 0x2a3   :  { %v836_v30 = vsub.f32 %v1977_v13, %v832_v42 }
 0x2a5   :  { %v2016_v9 = vmax.f32 %v836_v30, 0.0 }
 0x2a7   :  { %v850_v49 = vsel %vm734_vm8, %v2016_v9, 0.0  ;;  %vm1214_vm8 = vcmask 253952  }
 0x2a8   :  { %851 = vadd.xlane.f32.xlu2 %v850_v49 }
 0x30c   :  { %v849_v40 = vpop.xlane.xlu1 %848 }
 0x30d   :  { %v846_v36 = vpop.xlane.xlu0 %845  ;;  %v855_v13 = vadd.f32 1e-08, %v849_v40 }
 0x30e   :  { %v854_v37 = vadd.f32 1e-08, %v846_v36 }
 0x310   :  { %1302 = vrcp.f32 %v854_v37 }
 0x313   :  { %v843_v52 = vpop.xlane.xlu2 %842 }
 0x314   :  { %v853_v45 = vadd.f32 1e-08, %v843_v52 }
 0x316   :  { %1304 = vrcp.f32 %v853_v45  ;;  %v1303_v28 = vpop.eup %1302 }
 0x317   :  { %1306 = vrcp.f32 %v855_v13  ;;  %v862_v17 = vmul.f32 %v1303_v28, %v838_v51  ;;  %v2168_v51 = vsub.f32 %v1745_v0, %v1776_v21  ;;  %v951_v0 = vsub.f32 %v1737_v59, %v1889_v47 }
 0x318   :  { %v954_v59 = vsub.f32 %v1712_v31, %v1954_v11  ;;  %v958_v31 = vsub.f32 %v1706_v25, %v2024_v41  ;;  %v957_v11 = vsub.f32 %v1692_v33, %v2001_v5 }
 0x319   :  { %v962_v43 = vperm.slane %v862_v17, 0 }
 0x31b   :  { %v852_v53 = vpop.xlane.xlu2 %851  ;;  %v970_v19 = vmul.f32 %v962_v43, %v950_v23  ;;  %v969_v50 = vmul.f32 %v962_v43, %v949_v14  ;;  %v972_v1 = vmul.f32 %v962_v43, %v952_v4 }
 0x31c   :  { %v1305_v2 = vpop.eup %1304  ;;  %v856_v30 = vadd.f32 1e-08, %v852_v53  ;;  %v1313_v53 = vld [vmem:[%s2148_s2 + $0x20] sm:$0xff] }
 0x31d   :  { %v861_v6 = vmul.f32 %v1305_v2, %v837_v22  ;;  %v1307_v20 = vpop.eup %1306  ;;  %v996_v36 = vsel %vm94_vm0, %v970_v19, 0.0  ;;  %v993_v37 = vsel %vm94_vm0, %v969_v50, 0.0  ;;  %v1002_v45 = vsel %vm94_vm0, %v972_v1, 0.0  ;;  %v1314_v50 = vld [vmem:[%s2148_s2 + $0x18] sm:$0xff] }
 0x31e   :  { %v863_v58 = vmul.f32 %v1307_v20, %v2008_v10  ;;  %1308 = vrcp.f32 %v856_v30  ;;  %v971_v10 = vmul.f32 %v962_v43, %v951_v0 }
 0x31f   :  { %v961_v48 = vperm.slane %v861_v6, 0 }
 0x320   :  { %v963_v49 = vperm.slane %v863_v58, 0  ;;  %v999_v12 = vsel %vm94_vm0, %v971_v10, 0.0 }
 0x321   :  { %v967_v39 = vmul.f32 %v961_v48, %v2167_v62  ;;  %v966_v8 = vmul.f32 %v961_v48, %v946_v38  ;;  %v965_v34 = vmul.f32 %v961_v48, %v945_v3  ;;  %v968_v42 = vmul.f32 %v961_v48, %v2168_v51 }
 0x322   :  { %v973_v21 = vmul.f32 %v963_v49, %v953_v24  ;;  %v976_v15 = vmul.f32 %v963_v49, %v956_v46  ;;  %v975_v13 = vmul.f32 %v963_v49, %v955_v55  ;;  %v974_v28 = vmul.f32 %v963_v49, %v954_v59  ;;  %v1315_v24 = vld [vmem:[%s2148_s2 + $0x28] sm:$0xff] }
 0x323   :  { %v987_v7 = vsel %vm94_vm0, %v967_v39, 0.0  ;;  %v984_v22 = vsel %vm94_vm0, %v966_v8, 0.0  ;;  %v981_v35 = vsel %vm94_vm0, %v965_v34, 0.0  ;;  %v990_v18 = vsel %vm94_vm0, %v968_v42, 0.0  ;;  %v1310_v34 = vld [vmem:[%s2148_s2 + $0x8] sm:$0xff] }
 0x324   :  { %988 = vadd.xlane.f32.xlu2 %v987_v7  ;;  %985 = vadd.xlane.f32.xlu0 %v984_v22  ;;  %v1005_v52 = vsel %vm94_vm0, %v973_v21, 0.0  ;;  %v1309_v40 = vpop.eup %1308  ;;  %v1014_v6 = vsel %vm94_vm0, %v976_v15, 0.0  ;;  %v1011_v38 = vsel %vm94_vm0, %v975_v13, 0.0  ;;  %v1008_v60 = vsel %vm94_vm0, %v974_v28, 0.0  ;;  %v1311_v7 = vld [vmem:[%s2148_s2 + $0x10] sm:$0xff] }
 0x325   :  { %982 = vadd.xlane.f32.xlu1 %v981_v35  ;;  %v864_v47 = vmul.f32 %v1309_v40, %v2016_v9 }
 0x327   :  { %v964_v2 = vperm.slane %v864_v47, 0  ;;  %v1316_v47 = vld [vmem:[%s2148_s2 + $0x30] sm:$0xff] }
 0x329   :  { %v979_v54 = vmul.f32 %v964_v2, %v959_v56  ;;  %v978_v16 = vmul.f32 %v964_v2, %v958_v31  ;;  %v977_v9 = vmul.f32 %v964_v2, %v957_v11  ;;  %v980_v25 = vmul.f32 %v964_v2, %v960_v61  ;;  %v2170_v56 = vld [vmem:[#allocation8_spill] sm:$0xff]  ;;  %v2171_v11 = vld [vmem:[#allocation10_spill] sm:$0xff] }
 0x32b   :  { %v1023_v3 = vsel %vm94_vm0, %v979_v54, 0.0  ;;  %v1020_v17 = vsel %vm94_vm0, %v978_v16, 0.0  ;;  %v1017_v48 = vsel %vm94_vm0, %v977_v9, 0.0  ;;  %v1026_v29 = vsel %vm94_vm0, %v980_v25, 0.0 }
 0x32c   :  { %997 = vadd.xlane.f32.xlu2 %v996_v36  ;;  %994 = vadd.xlane.f32.xlu0 %v993_v37  ;;  %vm1157_vm0 = vcmask 261120  }
 0x32d   :  { %991 = vadd.xlane.f32.xlu1 %v990_v18 }
 0x334   :  { %1006 = vadd.xlane.f32.xlu2 %v1005_v52  ;;  %1003 = vadd.xlane.f32.xlu0 %v1002_v45  ;;  %v2169_v52 = vld [vmem:[#allocation9_spill] sm:$0xff] }
 0x335   :  { %1000 = vadd.xlane.f32.xlu1 %v999_v12 }
 0x33c   :  { %1015 = vadd.xlane.f32.xlu2 %v1014_v6  ;;  %1012 = vadd.xlane.f32.xlu0 %v1011_v38 }
 0x33d   :  { %1009 = vadd.xlane.f32.xlu1 %v1008_v60 }
 0x344   :  { %1024 = vadd.xlane.f32.xlu2 %v1023_v3  ;;  %1021 = vadd.xlane.f32.xlu0 %v1020_v17  ;;  %v2173_v17 = vld [vmem:[#allocation11_spill] sm:$0xff] }
 0x345   :  { %1018 = vadd.xlane.f32.xlu1 %v1017_v48 }
 0x34d   :  { %1027 = vadd.xlane.f32.xlu1 %v1026_v29  ;;  %v54_v29 = vld [vmem:[%s2152_s6] sm:$0xff] }
 0x397   :  { %v986_v33 = vpop.xlane.xlu0 %985  ;;  %v989_v5 = vpop.xlane.xlu2 %988 }
 0x398   :  { %v1030_v41 = vmul.f32 0.01, %v986_v33  ;;  %v983_v62 = vpop.xlane.xlu1 %982  ;;  %v1031_v39 = vmul.f32 0.01, %v989_v5 }
 0x399   :  { %v1029_v8 = vmul.f32 0.01, %v983_v62 }
 0x39a   :  { %v1046_v43 = vadd.f32 %v1310_v34, %v1030_v41  ;;  %v1047_v57 = vadd.f32 %v1311_v7, %v1031_v39  ;;  %v56_v39 = vld [vmem:[%s2152_s6 + $0x10] sm:$0xff] }
 0x39b   :  { %v1045_v22 = vadd.f32 %v1312_v32, %v1029_v8  ;;  %v57_v32 = vld [vmem:[%s2152_s6 + $0x18] sm:$0xff] }
 0x39c   :  { %1068 = vperm.xlu2 %1251, %v1046_v43   ;;  %1073 = vperm.xlu1 %1250, %v1047_v57  }
 0x39d   :  { %1063 = vperm.xlu0 %1249, %v1045_v22  }
 0x39f   :  { %v995_v35 = vpop.xlane.xlu0 %994  ;;  %v998_v20 = vpop.xlane.xlu2 %997 }
 0x3a0   :  { %v1033_v14 = vmul.f32 0.01, %v995_v35  ;;  %v992_v23 = vpop.xlane.xlu1 %991  ;;  %v1034_v42 = vmul.f32 0.01, %v998_v20 }
 0x3a1   :  { %v1032_v58 = vmul.f32 0.01, %v992_v23 }
 0x3a2   :  { %v1049_v19 = vadd.f32 %v1313_v53, %v1033_v14  ;;  %v1050_v4 = vadd.f32 %v1315_v24, %v1034_v42 }
 0x3a3   :  { %v1048_v51 = vadd.f32 %v1314_v50, %v1032_v58 }
 0x3a4   :  { %1083 = vperm.xlu2 %1251, %v1049_v19  }
 0x3a5   :  { %1078 = vperm.xlu0 %1249, %v1048_v51  }
 0x3a7   :  { %v1004_v30 = vpop.xlane.xlu0 %1003  ;;  %v1007_v49 = vpop.xlane.xlu2 %1006 }
 0x3a8   :  { %v1001_v36 = vpop.xlane.xlu1 %1000  ;;  %v1037_v37 = vmul.f32 0.01, %v1007_v49  ;;  %v1036_v6 = vmul.f32 0.01, %v1004_v30 }
 0x3a9   :  { %v1035_v40 = vmul.f32 0.01, %v1001_v36 }
 0x3aa   :  { %v1053_v18 = vadd.f32 %v1037_v37, %v1872_v63  ;;  %v1052_v31 = vadd.f32 %v1036_v6, %v2170_v56 }
 0x3ab   :  { %v1051_v15 = vadd.f32 %v1316_v47, %v1035_v40 }
 0x3ac   :  { %1103 = vperm.xlu1 %1250, %v1053_v18  }
 0x3ad   :  { %1088 = vperm.xlu0 %1249, %v1050_v4  }
 0x3af   :  { %v1013_v0 = vpop.xlane.xlu0 %1012  ;;  %v1016_v10 = vpop.xlane.xlu2 %1015 }
 0x3b0   :  { %v1010_v21 = vpop.xlane.xlu1 %1009  ;;  %v1039_v38 = vmul.f32 0.01, %v1013_v0  ;;  %v1040_v9 = vmul.f32 0.01, %v1016_v10 }
 0x3b1   :  { %v1038_v1 = vmul.f32 0.01, %v1010_v21 }
 0x3b2   :  { %v1056_v48 = vadd.f32 %v1040_v9, %v2173_v17 }
 0x3b3   :  { %v1054_v45 = vadd.f32 %v1038_v1, %v2169_v52 }
 0x3b5   :  { %1108 = vperm.xlu2 %1251, %v1054_v45   ;;  %v58_v45 = vld [vmem:[%s2153_s7] sm:$0x1]  ;;  %s1360_s7 = smov [#allocation5]  }
 0x3b6   :  { %s1223_s1 = sshll.u32 %s1360_s7, 4  ;;  %s1224_s1 = int_to_ptr.vmem [resolvable:$true] %s1223_s1 }
 0x3b7   :  { %v1022_v12 = vpop.xlane.xlu0 %1021  ;;  %v1025_v28 = vpop.xlane.xlu2 %1024 }
 0x3b8   :  { %v1042_v55 = vmul.f32 0.01, %v1022_v12  ;;  %v1019_v46 = vpop.xlane.xlu1 %1018  ;;  %v1043_v2 = vmul.f32 0.01, %v1025_v28 }
 0x3b9   :  { %v1041_v59 = vmul.f32 0.01, %v1019_v46 }
 0x3ba   :  { %v1058_v63 = vadd.f32 %v1042_v55, %v1996_v26  ;;  %v1059_v60 = vadd.f32 %v1043_v2, %v1984_v27  ;;  %v1055_v26 = vadd.f32 %v1039_v38, %v2171_v11  ;;  %v55_v27 = vld [vmem:[%s2152_s6 + $0x8] sm:$0xff] }
 0x3bb   :  { %v1057_v13 = vadd.f32 %v1041_v59, %v1939_v44  ;;  %v2172_v44 = vld [vmem:[#allocation12_spill] sm:$0xff] }
 0x3bc   :  { %1128 = vperm.xlu1 %1250, %v1058_v63  }
 0x3bd   :  { %1093 = vperm.xlu2 %1251, %v1051_v15   ;;  %1123 = vperm.xlu0 %1249, %v1057_v13  }
 0x3c0   :  { %v1028_v54 = vpop.xlane.xlu1 %1027 }
 0x3c1   :  { %v1044_v16 = vmul.f32 0.01, %v1028_v54 }
 0x3c3   :  { %v1060_v3 = vadd.f32 %v1044_v16, %v2172_v44 }
 0x3c4   :  { %1133 = vperm.xlu1 %1250, %v1059_v60  }
 0x3c5   :  { %1098 = vperm.xlu2 %1251, %v1052_v31   ;;  %1113 = vperm.xlu0 %1249, %v1055_v26  }
 0x3cc   :  { %1138 = vperm.xlu1 %1250, %v1060_v3  }
 0x3cd   :  { %1118 = vperm.xlu0 %1249, %v1056_v48  }
 0x3f6   :  { %v1069_v61 = vpop.permute.xlu2 %1068 }
 0x3f7   :  { %v1142_v41 = vmul.f32 %v1069_v61, %v55_v27 }
 0x3f9   :  { %v1159_v43 = vsel %vm1157_vm0, %v1142_v41, 0.0 }
 0x3fe   :  { %v1084_v25 = vpop.permute.xlu2 %1083 }
 0x3ff   :  { %v1145_v50 = vmul.f32 %v1084_v25, %v54_v29 }
 0x401   :  { %v1171_v18 = vsel %vm1157_vm0, %v1145_v50, 0.0 }
 0x40e   :  { %v1074_v8 = vpop.permute.xlu1 %1073 }
 0x40f   :  { %v1064_v33 = vpop.permute.xlu0 %1063  ;;  %v1109_v5 = vpop.permute.xlu2 %1108  ;;  %v1143_v7 = vmul.f32 %v1074_v8, %v56_v39 }
 0x410   :  { %v1141_v62 = vmul.f32 %v1064_v33, %v54_v29  ;;  %v1150_v9 = vmul.f32 %v1109_v5, %v55_v27 }
 0x411   :  { %v1161_v20 = vsel %vm1157_vm0, %v1143_v7, 0.0 }
 0x412   :  { %v1158_v34 = vsel %vm1157_vm0, %v1141_v62, 0.0  ;;  %v1185_v25 = vsel %vm1157_vm0, %v1150_v9, 0.0 }
 0x413   :  { %v1160_v57 = vadd.f32 %v1159_v43, %v1158_v34 }
 0x415   :  { %v1162_v23 = vadd.f32 %v1161_v20, %v1160_v57 }
 0x417   :  { %v1079_v22 = vpop.permute.xlu0 %1078  ;;  %v1094_v35 = vpop.permute.xlu2 %1093 }
 0x418   :  { %v1144_v14 = vmul.f32 %v1079_v22, %v57_v32  ;;  %v1147_v49 = vmul.f32 %v1094_v35, %v56_v39 }
 0x41a   :  { %v1163_v58 = vsel %vm1157_vm0, %v1144_v14, 0.0  ;;  %v1174_v1 = vsel %vm1157_vm0, %v1147_v49, 0.0 }
 0x41b   :  { %v1164_v53 = vadd.f32 %v1163_v58, %v1162_v23 }
 0x41d   :  { %v1165_v19 = vrot.slane %v1164_v53, 4 }
 0x41e   :  { %v1104_v40 = vpop.permute.xlu1 %1103 }
 0x41f   :  { %v1166_v51 = vadd.f32 %v1165_v19, %v1164_v53  ;;  %v1089_v42 = vpop.permute.xlu0 %1088  ;;  %v1099_v30 = vpop.permute.xlu2 %1098  ;;  %v1149_v54 = vmul.f32 %v1104_v40, %v54_v29 }
 0x420   :  { %v1146_v36 = vmul.f32 %v1089_v42, %v55_v27  ;;  %v1148_v4 = vmul.f32 %v1099_v30, %v57_v32 }
 0x421   :  { %v1167_v37 = vrot.slane %v1166_v51, 2  ;;  %v1184_v48 = vsel %vm1157_vm0, %v1149_v54, 0.0 }
 0x422   :  { %v1172_v24 = vsel %vm1157_vm0, %v1146_v36, 0.0  ;;  %v1176_v12 = vsel %vm1157_vm0, %v1148_v4, 0.0  ;;  %v1186_v8 = vadd.f32 %v1185_v25, %v1184_v48 }
 0x423   :  { %v1168_v0 = vadd.f32 %v1167_v37, %v1166_v51  ;;  %v1173_v21 = vadd.f32 %v1172_v24, %v1171_v18 }
 0x425   :  { %v1169_v10 = vrot.slane %v1168_v0, 1  ;;  %v1175_v52 = vadd.f32 %v1174_v1, %v1173_v21 }
 0x427   :  { %v1170_v55 = vadd.f32 %v1169_v10, %v1168_v0  ;;  %v1177_v46 = vadd.f32 %v1176_v12, %v1175_v52 }
 0x429   :  { %v1210_v59 = vadd.f32 %v1170_v55, %v58_v45  ;;  %v1178_v63 = vrot.slane %v1177_v46, 4 }
 0x42b   :  { %1215 = vst.msk [vmem:[#allocation5] sm:$0x1] %vm1214_vm8, %v1210_v59  ;;  %v1179_v47 = vadd.f32 %v1178_v63, %v1177_v46 }
 0x42d   :  { %v1180_v15 = vrot.slane %v1179_v47, 2 }
 0x42e   :  { %v1129_v13 = vpop.permute.xlu1 %1128 }
 0x42f   :  { %v1181_v28 = vadd.f32 %v1180_v15, %v1179_v47  ;;  %v1124_v2 = vpop.permute.xlu0 %1123  ;;  %v1154_v11 = vmul.f32 %v1129_v13, %v55_v27 }
 0x430   :  { %v1153_v31 = vmul.f32 %v1124_v2, %v54_v29 }
 0x431   :  { %v1182_v6 = vrot.slane %v1181_v28, 1  ;;  %v1198_v17 = vsel %vm1157_vm0, %v1154_v11, 0.0 }
 0x432   :  { %v1197_v3 = vsel %vm1157_vm0, %v1153_v31, 0.0 }
 0x433   :  { %v1183_v38 = vadd.f32 %v1182_v6, %v1181_v28  ;;  %v1199_v33 = vadd.f32 %v1198_v17, %v1197_v3 }
 0x435   :  { %v1211_v60 = vadd.f32 %v1183_v38, %v58_v45 }
 0x436   :  { %v1134_v56 = vpop.permute.xlu1 %1133 }
 0x437   :  { %1216 = vst.msk [vmem:[#allocation5 + $0x1] sm:$0x1] %vm1214_vm8, %v1211_v60  ;;  %v1114_v26 = vpop.permute.xlu0 %1113  ;;  %v1155_v16 = vmul.f32 %v1134_v56, %v56_v39 }
 0x438   :  { %v1151_v44 = vmul.f32 %v1114_v26, %v56_v39 }
 0x439   :  { %v1200_v61 = vsel %vm1157_vm0, %v1155_v16, 0.0 }
 0x43a   :  { %v1187_v41 = vsel %vm1157_vm0, %v1151_v44, 0.0  ;;  %v1201_v43 = vadd.f32 %v1200_v61, %v1199_v33 }
 0x43b   :  { %v1188_v5 = vadd.f32 %v1187_v41, %v1186_v8 }
 0x43e   :  { %v1139_v62 = vpop.permute.xlu1 %1138 }
 0x43f   :  { %v1119_v34 = vpop.permute.xlu0 %1118  ;;  %v1156_v29 = vmul.f32 %v1139_v62, %v57_v32 }
 0x440   :  { %v1152_v27 = vmul.f32 %v1119_v34, %v57_v32 }
 0x441   :  { %v1202_v39 = vsel %vm1157_vm0, %v1156_v29, 0.0 }
 0x442   :  { %v1189_v7 = vsel %vm1157_vm0, %v1152_v27, 0.0  ;;  %v1203_v57 = vadd.f32 %v1202_v39, %v1201_v43 }
 0x443   :  { %v1190_v22 = vadd.f32 %v1189_v7, %v1188_v5 }
 0x444   :  { %v1204_v35 = vrot.slane %v1203_v57, 4 }
 0x445   :  { %v1191_v20 = vrot.slane %v1190_v22, 4 }
 0x446   :  { %v1205_v14 = vadd.f32 %v1204_v35, %v1203_v57 }
 0x447   :  { %v1192_v23 = vadd.f32 %v1191_v20, %v1190_v22 }
 0x448   :  { %v1206_v58 = vrot.slane %v1205_v14, 2 }
 0x449   :  { %v1193_v53 = vrot.slane %v1192_v23, 2 }
 0x44a   :  { %v1207_v19 = vadd.f32 %v1206_v58, %v1205_v14 }
 0x44b   :  { %v1194_v50 = vadd.f32 %v1193_v53, %v1192_v23 }
 0x44c   :  { %v1208_v51 = vrot.slane %v1207_v19, 1 }
 0x44d   :  { %v1195_v42 = vrot.slane %v1194_v50, 1 }
 0x44e   :  { %v1209_v32 = vadd.f32 %v1208_v51, %v1207_v19 }
 0x44f   :  { %v1196_v30 = vadd.f32 %v1195_v42, %v1194_v50 }
 0x450   :  { %v1213_v49 = vadd.f32 %v1209_v32, %v58_v45 }
 0x451   :  { %v1212_v36 = vadd.f32 %v1196_v30, %v58_v45 }
 0x452   :  { %1218 = vst.msk [vmem:[#allocation5 + $0x3] sm:$0x1] %vm1214_vm8, %v1213_v49 }
 0x453   :  { %1217 = vst.msk [vmem:[#allocation5 + $0x2] sm:$0x1] %vm1214_vm8, %v1212_v36 }
 0x454   :  { %1231 = dma.vmem_to_hbm [thread:$0]  %s1224_s1, 64, %s1226_s13, [#allocation3], %s1361_s14, %s1361_s14, %s1362_s0  }
 0x455   :  { %1355 = dma.done.wait [#allocation3], 64  }
 0x456   :  { %1356 = vsyncadd [#allocation3], 4294967232 }
 0x457   :  { %1236 = vsyncpa [#allocation3], 1 }
 0x458   :  { %1237 = vsyncpa [#allocation4], 1 }

</bundles_post_ra>
